<compile_context>
chip_gen: v6e
topology: v6e:2x2x1
jax: 0.10.0
libtpu: 0.0.40
codegen_flags: <defaults>
</compile_context>

<pallas_src>
import functools
import math

import jax
import jax.numpy as jnp
from jax.experimental import pallas as pl
from jax.experimental.pallas import tpu as pltpu

# ---------------- small BERT-like config ----------------
VOCAB        = 128
HIDDEN       = 32
HEADS        = 4
HEAD_DIM     = HIDDEN // HEADS
LAYERS       = 2
INTERMEDIATE = 64
MAX_POS      = 16
NUM_LABELS   = 2
LN_EPS       = 1e-12

VMEM = pltpu.MemorySpace.VMEM
BF16 = jnp.bfloat16


def _vmem_specs(n):
    return [pl.BlockSpec(memory_space=VMEM) for _ in range(n)]


# ---------------- in-kernel helpers (values, f32 elementwise math) ----------------
def _layernorm(h, g, b):
    mean = jnp.mean(h, axis=-1, keepdims=True)
    var = jnp.mean((h - mean) ** 2, axis=-1, keepdims=True)
    return (h - mean) * jax.lax.rsqrt(var + LN_EPS) * g + b


def _gelu(y):
    # TODO(synk): BERT uses erf-GELU; tanh-approx used here (numerically very
    # close, avoids depending on an erf lowering in Mosaic).
    c = 0.7978845608028654  # sqrt(2/pi)
    return 0.5 * y * (1.0 + jnp.tanh(c * (y + 0.044715 * y * y * y)))


def _encoder_layer(B, S, h, addmask, wqkv, bqkv, wo, bo, ln1g, ln1b,
                   w1, b1, w2, b2, ln2g, ln2b):
    """One full BERT encoder layer on VMEM/vreg-resident values.

    h: (B*S, HIDDEN) f32.  Returns new h, same shape/dtype.
    """
    scale = 1.0 / math.sqrt(HEAD_DIM)

    # --- fused QKV projection: one (B*S, H) x (H, 3H) bf16 matmul, f32 accum ---
    h_bf = h.astype(BF16)                                   # single bf16 shadow of h
    qkv = jnp.dot(h_bf, wqkv, preferred_element_type=jnp.float32) + bqkv
    q = qkv[:, 0 * HIDDEN:1 * HIDDEN].reshape(B, S, HIDDEN).astype(BF16)
    k = qkv[:, 1 * HIDDEN:2 * HIDDEN].reshape(B, S, HIDDEN).astype(BF16)
    v = qkv[:, 2 * HIDDEN:3 * HIDDEN].reshape(B, S, HIDDEN).astype(BF16)

    # --- attention: per-head context stays in vregs, merged as a value ---
    # TODO(synk): at real sizes batch the heads into single 'bhqd,bhkd->bhqk' /
    # 'bhqk,bhkd->bhqd' einsums; at HEADS=4 the unrolled loop is filler and
    # avoids relying on a 4-D transpose lowering in Mosaic.
    ctx_heads = []
    for hh in range(HEADS):                                  # unrolled, HEADS == 4
        sl = slice(hh * HEAD_DIM, (hh + 1) * HEAD_DIM)
        s = jnp.einsum('bqd,bkd->bqk', q[:, :, sl], k[:, :, sl],
                       preferred_element_type=jnp.float32) * scale
        s = s + addmask
        s = s - jnp.max(s, axis=-1, keepdims=True)
        p = jnp.exp(s)
        # EUP approx reciprocal instead of a VPU divide
        p = p * pl.reciprocal(jnp.sum(p, axis=-1, keepdims=True), approx=True)
        ctx_heads.append(jnp.einsum('bqk,bkd->bqd', p.astype(BF16), v[:, :, sl],
                                    preferred_element_type=jnp.float32))
    ctx = jnp.concatenate(ctx_heads, axis=-1).reshape(B * S, HIDDEN)

    # --- attention output projection + residual + LayerNorm ---
    attn_out = jnp.dot(ctx.astype(BF16), wo, preferred_element_type=jnp.float32) + bo
    h1 = _layernorm(h + attn_out, ln1g, ln1b)

    # --- FFN (intermediate activation stays in vregs/VMEM) + residual + LN ---
    h1_bf = h1.astype(BF16)
    ffn = _gelu(jnp.dot(h1_bf, w1, preferred_element_type=jnp.float32) + b1)
    ffn2 = jnp.dot(ffn.astype(BF16), w2, preferred_element_type=jnp.float32) + b2
    return _layernorm(h1 + ffn2, ln2g, ln2b)


# ---------------- fused whole-model kernel body ----------------
def bert_forward_kernel(emb_ref, mask_ref, egl_ref, ebl_ref,
                        wqkv_ref, bqkv_ref, wo_ref, bo_ref,
                        ln1g_ref, ln1b_ref, w1_ref, b1_ref, w2_ref, b2_ref,
                        ln2g_ref, ln2b_ref, o_ref, *, B, S):
    # embedding LayerNorm
    h = _layernorm(emb_ref[...], egl_ref[...], ebl_ref[...])

    # HF-style additive attention mask, broadcast over query rows: (B, 1, S)
    addmask = mask_ref[...][:, None, :]

    # unrolled layer loop; all layer weights are VMEM-resident (stacked refs)
    for li in range(LAYERS):
        h = _encoder_layer(
            B, S, h, addmask,
            wqkv_ref[li], bqkv_ref[li], wo_ref[li], bo_ref[li],
            ln1g_ref[li], ln1b_ref[li], w1_ref[li], b1_ref[li],
            w2_ref[li], b2_ref[li], ln2g_ref[li], ln2b_ref[li])

    o_ref[...] = h                                           # lane-dense (B*S, H)


# ---------------- thin wrapper around pallas_call ----------------
def pallas_bert_forward(emb, addmask, params, B, S):
    args = [emb, addmask, params['emb_ln_g'], params['emb_ln_b'],
            params['wqkv'], params['bqkv'], params['wo'], params['bo'],
            params['ln1_g'], params['ln1_b'], params['w1'], params['b1'],
            params['w2'], params['b2'], params['ln2_g'], params['ln2_b']]
    return pl.pallas_call(
        functools.partial(bert_forward_kernel, B=B, S=S),
        out_shape=jax.ShapeDtypeStruct((B * S, HIDDEN), jnp.float32),
        in_specs=_vmem_specs(len(args)),
        out_specs=pl.BlockSpec(memory_space=VMEM),
    )(*args)


# ---------------- deterministic parameter init (stacked per-layer weights) ----------------
def init_params(key):
    def dense(k, fan_in, fan_out, dtype=jnp.float32):
        return (jax.random.normal(k, (fan_in, fan_out), jnp.float32) * 0.02).astype(dtype)

    keys = iter(jax.random.split(key, 64))
    params = {
        'word_emb': jax.random.normal(next(keys), (VOCAB, HIDDEN), jnp.float32) * 0.02,
        'pos_emb':  jax.random.normal(next(keys), (MAX_POS, HIDDEN), jnp.float32) * 0.02,
        'type_emb': jax.random.normal(next(keys), (2, HIDDEN), jnp.float32) * 0.02,
        'emb_ln_g': jnp.ones((1, HIDDEN), jnp.float32),
        'emb_ln_b': jnp.zeros((1, HIDDEN), jnp.float32),
        # classifier head stays f32 and runs in the JAX wrapper (lane-dense
        # kernel output; (B, H) x (H, 2) is negligible glue).
        'cls_w': dense(next(keys), HIDDEN, NUM_LABELS, jnp.float32),
        'cls_b': jnp.zeros((NUM_LABELS,), jnp.float32),
    }

    wqkv, wo, w1, w2 = [], [], [], []
    for _ in range(LAYERS):
        wq = dense(next(keys), HIDDEN, HIDDEN)
        wk = dense(next(keys), HIDDEN, HIDDEN)
        wv = dense(next(keys), HIDDEN, HIDDEN)
        wqkv.append(jnp.concatenate([wq, wk, wv], axis=1).astype(BF16))
        wo.append(dense(next(keys), HIDDEN, HIDDEN, BF16))
        w1.append(dense(next(keys), HIDDEN, INTERMEDIATE, BF16))
        w2.append(dense(next(keys), INTERMEDIATE, HIDDEN, BF16))

    params.update({
        'wqkv': jnp.stack(wqkv),                                        # (L, H, 3H) bf16
        'bqkv': jnp.zeros((LAYERS, 1, 3 * HIDDEN), jnp.float32),
        'wo':   jnp.stack(wo),                                          # (L, H, H) bf16
        'bo':   jnp.zeros((LAYERS, 1, HIDDEN), jnp.float32),
        'ln1_g': jnp.ones((LAYERS, 1, HIDDEN), jnp.float32),
        'ln1_b': jnp.zeros((LAYERS, 1, HIDDEN), jnp.float32),
        'w1':   jnp.stack(w1),                                          # (L, H, I) bf16
        'b1':   jnp.zeros((LAYERS, 1, INTERMEDIATE), jnp.float32),
        'w2':   jnp.stack(w2),                                          # (L, I, H) bf16
        'b2':   jnp.zeros((LAYERS, 1, HIDDEN), jnp.float32),
        'ln2_g': jnp.ones((LAYERS, 1, HIDDEN), jnp.float32),
        'ln2_b': jnp.zeros((LAYERS, 1, HIDDEN), jnp.float32),
    })
    return params


# ---------------- forward pass (gathers/CLS select in JAX, BERT compute in Pallas) ----------------
def bert_classifier_forward(params, input_ids, attention_mask):
    B, S = input_ids.shape

    # embeddings (gather is glue), summed in f32; LayerNorm happens in-kernel
    word = jnp.take(params['word_emb'], input_ids, axis=0)           # (B,S,H)
    pos = params['pos_emb'][:S][None, :, :]                          # (1,S,H)
    typ = params['type_emb'][0][None, None, :]                       # token_type_ids == 0
    emb = (word + pos + typ).reshape(B * S, HIDDEN)

    # HF-style extended additive attention mask, (B, S)
    addmask = (1.0 - attention_mask.astype(jnp.float32)) * -10000.0

    # one fused kernel for embed-LN + all encoder layers
    h = pallas_bert_forward(emb, addmask, params, B, S)

    last_hidden = h.reshape(B, S, HIDDEN)
    cls_embedding = last_hidden[:, 0, :]                              # (B, HIDDEN)
    logits = cls_embedding @ params['cls_w'] + params['cls_b']        # (B, NUM_LABELS)
    return logits, cls_embedding


if __name__ == "__main__":
    B, S = 2, 8
    key = jax.random.PRNGKey(0)
    pkey, ikey = jax.random.split(key)

    params = init_params(pkey)
    input_ids = jax.random.randint(ikey, (B, S), 0, VOCAB, dtype=jnp.int32)
    attention_mask = jnp.array([[1, 1, 1, 1, 1, 1, 1, 1],
                                [1, 1, 1, 1, 1, 1, 0, 0]], dtype=jnp.float32)

    logits, cls = jax.jit(bert_classifier_forward)(params, input_ids, attention_mask)
    jax.block_until_ready((logits, cls))

    assert logits.shape == (B, NUM_LABELS)
    assert cls.shape == (B, HIDDEN)
    assert bool(jnp.all(jnp.isfinite(logits))) and bool(jnp.all(jnp.isfinite(cls)))
    print("KERNEL_OK")
</pallas_src>

<mosaic_0001>
module attributes {stable_mosaic.version = 11 : i64} {
  func.func @bert_forward_kernel(%arg0: memref<16x32xf32, #tpu.memory_space<vmem>>, %arg1: memref<2x8xf32, #tpu.memory_space<vmem>>, %arg2: memref<1x32xf32, #tpu.memory_space<vmem>>, %arg3: memref<1x32xf32, #tpu.memory_space<vmem>>, %arg4: memref<2x32x96xbf16, #tpu.memory_space<vmem>>, %arg5: memref<2x1x96xf32, #tpu.memory_space<vmem>>, %arg6: memref<2x32x32xbf16, #tpu.memory_space<vmem>>, %arg7: memref<2x1x32xf32, #tpu.memory_space<vmem>>, %arg8: memref<2x1x32xf32, #tpu.memory_space<vmem>>, %arg9: memref<2x1x32xf32, #tpu.memory_space<vmem>>, %arg10: memref<2x32x64xbf16, #tpu.memory_space<vmem>>, %arg11: memref<2x1x64xf32, #tpu.memory_space<vmem>>, %arg12: memref<2x64x32xbf16, #tpu.memory_space<vmem>>, %arg13: memref<2x1x32xf32, #tpu.memory_space<vmem>>, %arg14: memref<2x1x32xf32, #tpu.memory_space<vmem>>, %arg15: memref<2x1x32xf32, #tpu.memory_space<vmem>>, %arg16: memref<16x32xf32, #tpu.memory_space<vmem>>) attributes {dimension_semantics = [], scalar_prefetch = 0 : i64, scratch_operands = 0 : i64, tpu.core_type = #tpu.core_type<tc>} {
    %c0 = arith.constant 0 : index
    %c0_0 = arith.constant 0 : index
    %0 = vector.load %arg0[%c0, %c0_0] : memref<16x32xf32, #tpu.memory_space<vmem>>, vector<16x32xf32>
    %c0_1 = arith.constant 0 : index
    %c0_2 = arith.constant 0 : index
    %1 = vector.load %arg2[%c0_1, %c0_2] : memref<1x32xf32, #tpu.memory_space<vmem>>, vector<1x32xf32>
    %c0_3 = arith.constant 0 : index
    %c0_4 = arith.constant 0 : index
    %2 = vector.load %arg3[%c0_3, %c0_4] : memref<1x32xf32, #tpu.memory_space<vmem>>, vector<1x32xf32>
    %cst = arith.constant dense<0.000000e+00> : vector<16xf32>
    %3 = vector.multi_reduction <add>, %0, %cst [1] : vector<16x32xf32> to vector<16xf32>
    %4 = vector.shape_cast %3 : vector<16xf32> to vector<16x1xf32>
    %cst_5 = arith.constant 3.200000e+01 : f32
    %5 = vector.broadcast %cst_5 : f32 to vector<16x1xf32>
    %6 = arith.divf %4, %5 : vector<16x1xf32>
    %7 = vector.broadcast %6 : vector<16x1xf32> to vector<16x32xf32>
    %8 = arith.subf %0, %7 : vector<16x32xf32>
    %9 = arith.mulf %8, %8 : vector<16x32xf32>
    %cst_6 = arith.constant dense<0.000000e+00> : vector<16xf32>
    %10 = vector.multi_reduction <add>, %9, %cst_6 [1] : vector<16x32xf32> to vector<16xf32>
    %11 = vector.shape_cast %10 : vector<16xf32> to vector<16x1xf32>
    %cst_7 = arith.constant 3.200000e+01 : f32
    %12 = vector.broadcast %cst_7 : f32 to vector<16x1xf32>
    %13 = arith.divf %11, %12 : vector<16x1xf32>
    %14 = vector.broadcast %6 : vector<16x1xf32> to vector<16x32xf32>
    %15 = arith.subf %0, %14 : vector<16x32xf32>
    %cst_8 = arith.constant 9.99999996E-13 : f32
    %16 = vector.broadcast %cst_8 : f32 to vector<16x1xf32>
    %17 = arith.addf %13, %16 : vector<16x1xf32>
    %18 = math.rsqrt %17 : vector<16x1xf32>
    %19 = vector.broadcast %18 : vector<16x1xf32> to vector<16x32xf32>
    %20 = arith.mulf %15, %19 : vector<16x32xf32>
    %21 = vector.broadcast %1 : vector<1x32xf32> to vector<16x32xf32>
    %22 = arith.mulf %20, %21 : vector<16x32xf32>
    %23 = vector.broadcast %2 : vector<1x32xf32> to vector<16x32xf32>
    %24 = arith.addf %22, %23 : vector<16x32xf32>
    %c0_9 = arith.constant 0 : index
    %c0_10 = arith.constant 0 : index
    %25 = vector.load %arg1[%c0_9, %c0_10] : memref<2x8xf32, #tpu.memory_space<vmem>>, vector<2x8xf32>
    %26 = vector.shape_cast %25 : vector<2x8xf32> to vector<2x1x8xf32>
    %c0_11 = arith.constant 0 : index
    %c0_12 = arith.constant 0 : index
    %c0_13 = arith.constant 0 : index
    %27 = vector.load %arg4[%c0_11, %c0_12, %c0_13] : memref<2x32x96xbf16, #tpu.memory_space<vmem>>, vector<1x32x96xbf16>
    %28 = vector.shape_cast %27 : vector<1x32x96xbf16> to vector<32x96xbf16>
    %c0_14 = arith.constant 0 : index
    %c0_15 = arith.constant 0 : index
    %c0_16 = arith.constant 0 : index
    %29 = vector.load %arg5[%c0_14, %c0_15, %c0_16] : memref<2x1x96xf32, #tpu.memory_space<vmem>>, vector<1x1x96xf32>
    %30 = vector.shape_cast %29 : vector<1x1x96xf32> to vector<1x96xf32>
    %c0_17 = arith.constant 0 : index
    %c0_18 = arith.constant 0 : index
    %c0_19 = arith.constant 0 : index
    %31 = vector.load %arg6[%c0_17, %c0_18, %c0_19] : memref<2x32x32xbf16, #tpu.memory_space<vmem>>, vector<1x32x32xbf16>
    %32 = vector.shape_cast %31 : vector<1x32x32xbf16> to vector<32x32xbf16>
    %c0_20 = arith.constant 0 : index
    %c0_21 = arith.constant 0 : index
    %c0_22 = arith.constant 0 : index
    %33 = vector.load %arg7[%c0_20, %c0_21, %c0_22] : memref<2x1x32xf32, #tpu.memory_space<vmem>>, vector<1x1x32xf32>
    %34 = vector.shape_cast %33 : vector<1x1x32xf32> to vector<1x32xf32>
    %c0_23 = arith.constant 0 : index
    %c0_24 = arith.constant 0 : index
    %c0_25 = arith.constant 0 : index
    %35 = vector.load %arg8[%c0_23, %c0_24, %c0_25] : memref<2x1x32xf32, #tpu.memory_space<vmem>>, vector<1x1x32xf32>
    %36 = vector.shape_cast %35 : vector<1x1x32xf32> to vector<1x32xf32>
    %c0_26 = arith.constant 0 : index
    %c0_27 = arith.constant 0 : index
    %c0_28 = arith.constant 0 : index
    %37 = vector.load %arg9[%c0_26, %c0_27, %c0_28] : memref<2x1x32xf32, #tpu.memory_space<vmem>>, vector<1x1x32xf32>
    %38 = vector.shape_cast %37 : vector<1x1x32xf32> to vector<1x32xf32>
    %c0_29 = arith.constant 0 : index
    %c0_30 = arith.constant 0 : index
    %c0_31 = arith.constant 0 : index
    %39 = vector.load %arg10[%c0_29, %c0_30, %c0_31] : memref<2x32x64xbf16, #tpu.memory_space<vmem>>, vector<1x32x64xbf16>
    %40 = vector.shape_cast %39 : vector<1x32x64xbf16> to vector<32x64xbf16>
    %c0_32 = arith.constant 0 : index
    %c0_33 = arith.constant 0 : index
    %c0_34 = arith.constant 0 : index
    %41 = vector.load %arg11[%c0_32, %c0_33, %c0_34] : memref<2x1x64xf32, #tpu.memory_space<vmem>>, vector<1x1x64xf32>
    %42 = vector.shape_cast %41 : vector<1x1x64xf32> to vector<1x64xf32>
    %c0_35 = arith.constant 0 : index
    %c0_36 = arith.constant 0 : index
    %c0_37 = arith.constant 0 : index
    %43 = vector.load %arg12[%c0_35, %c0_36, %c0_37] : memref<2x64x32xbf16, #tpu.memory_space<vmem>>, vector<1x64x32xbf16>
    %44 = vector.shape_cast %43 : vector<1x64x32xbf16> to vector<64x32xbf16>
    %c0_38 = arith.constant 0 : index
    %c0_39 = arith.constant 0 : index
    %c0_40 = arith.constant 0 : index
    %45 = vector.load %arg13[%c0_38, %c0_39, %c0_40] : memref<2x1x32xf32, #tpu.memory_space<vmem>>, vector<1x1x32xf32>
    %46 = vector.shape_cast %45 : vector<1x1x32xf32> to vector<1x32xf32>
    %c0_41 = arith.constant 0 : index
    %c0_42 = arith.constant 0 : index
    %c0_43 = arith.constant 0 : index
    %47 = vector.load %arg14[%c0_41, %c0_42, %c0_43] : memref<2x1x32xf32, #tpu.memory_space<vmem>>, vector<1x1x32xf32>
    %48 = vector.shape_cast %47 : vector<1x1x32xf32> to vector<1x32xf32>
    %c0_44 = arith.constant 0 : index
    %c0_45 = arith.constant 0 : index
    %c0_46 = arith.constant 0 : index
    %49 = vector.load %arg15[%c0_44, %c0_45, %c0_46] : memref<2x1x32xf32, #tpu.memory_space<vmem>>, vector<1x1x32xf32>
    %50 = vector.shape_cast %49 : vector<1x1x32xf32> to vector<1x32xf32>
    %51 = arith.truncf %24 : vector<16x32xf32> to vector<16x32xbf16>
    %cst_47 = arith.constant dense<0.000000e+00> : vector<16x96xf32>
    %52 = tpu.matmul %51, %28, %cst_47 {dimension_numbers = #tpu.dot_dimension_numbers<[1], [0], [0], [1], [0, 0, 1, 1], [], []>} : vector<16x32xbf16>, vector<32x96xbf16>, vector<16x96xf32> -> vector<16x96xf32>
    %53 = vector.broadcast %30 : vector<1x96xf32> to vector<16x96xf32>
    %54 = arith.addf %52, %53 : vector<16x96xf32>
    %55 = vector.extract_strided_slice %54 {offsets = [0, 0], sizes = [16, 32], strides = [1, 1]} : vector<16x96xf32> to vector<16x32xf32>
    %56 = vector.shape_cast %55 : vector<16x32xf32> to vector<2x8x32xf32>
    %57 = arith.truncf %56 : vector<2x8x32xf32> to vector<2x8x32xbf16>
    %58 = vector.extract_strided_slice %54 {offsets = [0, 32], sizes = [16, 32], strides = [1, 1]} : vector<16x96xf32> to vector<16x32xf32>
    %59 = vector.shape_cast %58 : vector<16x32xf32> to vector<2x8x32xf32>
    %60 = arith.truncf %59 : vector<2x8x32xf32> to vector<2x8x32xbf16>
    %61 = vector.extract_strided_slice %54 {offsets = [0, 64], sizes = [16, 32], strides = [1, 1]} : vector<16x96xf32> to vector<16x32xf32>
    %62 = vector.shape_cast %61 : vector<16x32xf32> to vector<2x8x32xf32>
    %63 = arith.truncf %62 : vector<2x8x32xf32> to vector<2x8x32xbf16>
    %64 = vector.extract_strided_slice %57 {offsets = [0, 0, 0], sizes = [2, 8, 8], strides = [1, 1, 1]} : vector<2x8x32xbf16> to vector<2x8x8xbf16>
    %65 = vector.extract_strided_slice %60 {offsets = [0, 0, 0], sizes = [2, 8, 8], strides = [1, 1, 1]} : vector<2x8x32xbf16> to vector<2x8x8xbf16>
    "tpu.trace_start"() <{level = 10 : i32, message = "bqd,bkd->bqk"}> : () -> ()
    %cst_48 = arith.constant dense<0.000000e+00> : vector<2x8x8xf32>
    %66 = tpu.matmul %64, %65, %cst_48 {dimension_numbers = #tpu.dot_dimension_numbers<[2], [2], [1], [1], [0, 0, 0, 1, 1, 1], [0], [0]>} : vector<2x8x8xbf16>, vector<2x8x8xbf16>, vector<2x8x8xf32> -> vector<2x8x8xf32>
    "tpu.trace_stop"() : () -> ()
    %cst_49 = arith.constant 0.353553385 : f32
    %67 = vector.broadcast %cst_49 : f32 to vector<2x8x8xf32>
    %68 = arith.mulf %66, %67 : vector<2x8x8xf32>
    %69 = vector.broadcast %26 : vector<2x1x8xf32> to vector<2x8x8xf32>
    %70 = arith.addf %68, %69 : vector<2x8x8xf32>
    %cst_50 = arith.constant dense<0xFF800000> : vector<2x8xf32>
    %71 = vector.multi_reduction <maximumf>, %70, %cst_50 [2] : vector<2x8x8xf32> to vector<2x8xf32>
    %72 = vector.shape_cast %71 : vector<2x8xf32> to vector<2x8x1xf32>
    %73 = vector.broadcast %72 : vector<2x8x1xf32> to vector<2x8x8xf32>
    %74 = arith.subf %70, %73 : vector<2x8x8xf32>
    %75 = math.exp %74 : vector<2x8x8xf32>
    %cst_51 = arith.constant dense<0.000000e+00> : vector<2x8xf32>
    %76 = vector.multi_reduction <add>, %75, %cst_51 [2] : vector<2x8x8xf32> to vector<2x8xf32>
    %77 = vector.shape_cast %76 : vector<2x8xf32> to vector<2x8x1xf32>
    %78 = tpu.reciprocal %77 {approx = true} : vector<2x8x1xf32> -> vector<2x8x1xf32>
    %79 = vector.broadcast %78 : vector<2x8x1xf32> to vector<2x8x8xf32>
    %80 = arith.mulf %75, %79 : vector<2x8x8xf32>
    %81 = arith.truncf %80 : vector<2x8x8xf32> to vector<2x8x8xbf16>
    %82 = vector.extract_strided_slice %63 {offsets = [0, 0, 0], sizes = [2, 8, 8], strides = [1, 1, 1]} : vector<2x8x32xbf16> to vector<2x8x8xbf16>
    "tpu.trace_start"() <{level = 10 : i32, message = "bqk,bkd->bqd"}> : () -> ()
    %cst_52 = arith.constant dense<0.000000e+00> : vector<2x8x8xf32>
    %83 = tpu.matmul %81, %82, %cst_52 {dimension_numbers = #tpu.dot_dimension_numbers<[2], [1], [1], [2], [0, 0, 0, 1, 1, 2], [0], [0]>} : vector<2x8x8xbf16>, vector<2x8x8xbf16>, vector<2x8x8xf32> -> vector<2x8x8xf32>
    "tpu.trace_stop"() : () -> ()
    %84 = vector.extract_strided_slice %57 {offsets = [0, 0, 8], sizes = [2, 8, 8], strides = [1, 1, 1]} : vector<2x8x32xbf16> to vector<2x8x8xbf16>
    %85 = vector.extract_strided_slice %60 {offsets = [0, 0, 8], sizes = [2, 8, 8], strides = [1, 1, 1]} : vector<2x8x32xbf16> to vector<2x8x8xbf16>
    "tpu.trace_start"() <{level = 10 : i32, message = "bqd,bkd->bqk"}> : () -> ()
    %cst_53 = arith.constant dense<0.000000e+00> : vector<2x8x8xf32>
    %86 = tpu.matmul %84, %85, %cst_53 {dimension_numbers = #tpu.dot_dimension_numbers<[2], [2], [1], [1], [0, 0, 0, 1, 1, 1], [0], [0]>} : vector<2x8x8xbf16>, vector<2x8x8xbf16>, vector<2x8x8xf32> -> vector<2x8x8xf32>
    "tpu.trace_stop"() : () -> ()
    %cst_54 = arith.constant 0.353553385 : f32
    %87 = vector.broadcast %cst_54 : f32 to vector<2x8x8xf32>
    %88 = arith.mulf %86, %87 : vector<2x8x8xf32>
    %89 = vector.broadcast %26 : vector<2x1x8xf32> to vector<2x8x8xf32>
    %90 = arith.addf %88, %89 : vector<2x8x8xf32>
    %cst_55 = arith.constant dense<0xFF800000> : vector<2x8xf32>
    %91 = vector.multi_reduction <maximumf>, %90, %cst_55 [2] : vector<2x8x8xf32> to vector<2x8xf32>
    %92 = vector.shape_cast %91 : vector<2x8xf32> to vector<2x8x1xf32>
    %93 = vector.broadcast %92 : vector<2x8x1xf32> to vector<2x8x8xf32>
    %94 = arith.subf %90, %93 : vector<2x8x8xf32>
    %95 = math.exp %94 : vector<2x8x8xf32>
    %cst_56 = arith.constant dense<0.000000e+00> : vector<2x8xf32>
    %96 = vector.multi_reduction <add>, %95, %cst_56 [2] : vector<2x8x8xf32> to vector<2x8xf32>
    %97 = vector.shape_cast %96 : vector<2x8xf32> to vector<2x8x1xf32>
    %98 = tpu.reciprocal %97 {approx = true} : vector<2x8x1xf32> -> vector<2x8x1xf32>
    %99 = vector.broadcast %98 : vector<2x8x1xf32> to vector<2x8x8xf32>
    %100 = arith.mulf %95, %99 : vector<2x8x8xf32>
    %101 = arith.truncf %100 : vector<2x8x8xf32> to vector<2x8x8xbf16>
    %102 = vector.extract_strided_slice %63 {offsets = [0, 0, 8], sizes = [2, 8, 8], strides = [1, 1, 1]} : vector<2x8x32xbf16> to vector<2x8x8xbf16>
    "tpu.trace_start"() <{level = 10 : i32, message = "bqk,bkd->bqd"}> : () -> ()
    %cst_57 = arith.constant dense<0.000000e+00> : vector<2x8x8xf32>
    %103 = tpu.matmul %101, %102, %cst_57 {dimension_numbers = #tpu.dot_dimension_numbers<[2], [1], [1], [2], [0, 0, 0, 1, 1, 2], [0], [0]>} : vector<2x8x8xbf16>, vector<2x8x8xbf16>, vector<2x8x8xf32> -> vector<2x8x8xf32>
    "tpu.trace_stop"() : () -> ()
    %104 = vector.extract_strided_slice %57 {offsets = [0, 0, 16], sizes = [2, 8, 8], strides = [1, 1, 1]} : vector<2x8x32xbf16> to vector<2x8x8xbf16>
    %105 = vector.extract_strided_slice %60 {offsets = [0, 0, 16], sizes = [2, 8, 8], strides = [1, 1, 1]} : vector<2x8x32xbf16> to vector<2x8x8xbf16>
    "tpu.trace_start"() <{level = 10 : i32, message = "bqd,bkd->bqk"}> : () -> ()
    %cst_58 = arith.constant dense<0.000000e+00> : vector<2x8x8xf32>
    %106 = tpu.matmul %104, %105, %cst_58 {dimension_numbers = #tpu.dot_dimension_numbers<[2], [2], [1], [1], [0, 0, 0, 1, 1, 1], [0], [0]>} : vector<2x8x8xbf16>, vector<2x8x8xbf16>, vector<2x8x8xf32> -> vector<2x8x8xf32>
    "tpu.trace_stop"() : () -> ()
    %cst_59 = arith.constant 0.353553385 : f32
    %107 = vector.broadcast %cst_59 : f32 to vector<2x8x8xf32>
    %108 = arith.mulf %106, %107 : vector<2x8x8xf32>
    %109 = vector.broadcast %26 : vector<2x1x8xf32> to vector<2x8x8xf32>
    %110 = arith.addf %108, %109 : vector<2x8x8xf32>
    %cst_60 = arith.constant dense<0xFF800000> : vector<2x8xf32>
    %111 = vector.multi_reduction <maximumf>, %110, %cst_60 [2] : vector<2x8x8xf32> to vector<2x8xf32>
    %112 = vector.shape_cast %111 : vector<2x8xf32> to vector<2x8x1xf32>
    %113 = vector.broadcast %112 : vector<2x8x1xf32> to vector<2x8x8xf32>
    %114 = arith.subf %110, %113 : vector<2x8x8xf32>
    %115 = math.exp %114 : vector<2x8x8xf32>
    %cst_61 = arith.constant dense<0.000000e+00> : vector<2x8xf32>
    %116 = vector.multi_reduction <add>, %115, %cst_61 [2] : vector<2x8x8xf32> to vector<2x8xf32>
    %117 = vector.shape_cast %116 : vector<2x8xf32> to vector<2x8x1xf32>
    %118 = tpu.reciprocal %117 {approx = true} : vector<2x8x1xf32> -> vector<2x8x1xf32>
    %119 = vector.broadcast %118 : vector<2x8x1xf32> to vector<2x8x8xf32>
    %120 = arith.mulf %115, %119 : vector<2x8x8xf32>
    %121 = arith.truncf %120 : vector<2x8x8xf32> to vector<2x8x8xbf16>
    %122 = vector.extract_strided_slice %63 {offsets = [0, 0, 16], sizes = [2, 8, 8], strides = [1, 1, 1]} : vector<2x8x32xbf16> to vector<2x8x8xbf16>
    "tpu.trace_start"() <{level = 10 : i32, message = "bqk,bkd->bqd"}> : () -> ()
    %cst_62 = arith.constant dense<0.000000e+00> : vector<2x8x8xf32>
    %123 = tpu.matmul %121, %122, %cst_62 {dimension_numbers = #tpu.dot_dimension_numbers<[2], [1], [1], [2], [0, 0, 0, 1, 1, 2], [0], [0]>} : vector<2x8x8xbf16>, vector<2x8x8xbf16>, vector<2x8x8xf32> -> vector<2x8x8xf32>
    "tpu.trace_stop"() : () -> ()
    %124 = vector.extract_strided_slice %57 {offsets = [0, 0, 24], sizes = [2, 8, 8], strides = [1, 1, 1]} : vector<2x8x32xbf16> to vector<2x8x8xbf16>
    %125 = vector.extract_strided_slice %60 {offsets = [0, 0, 24], sizes = [2, 8, 8], strides = [1, 1, 1]} : vector<2x8x32xbf16> to vector<2x8x8xbf16>
    "tpu.trace_start"() <{level = 10 : i32, message = "bqd,bkd->bqk"}> : () -> ()
    %cst_63 = arith.constant dense<0.000000e+00> : vector<2x8x8xf32>
    %126 = tpu.matmul %124, %125, %cst_63 {dimension_numbers = #tpu.dot_dimension_numbers<[2], [2], [1], [1], [0, 0, 0, 1, 1, 1], [0], [0]>} : vector<2x8x8xbf16>, vector<2x8x8xbf16>, vector<2x8x8xf32> -> vector<2x8x8xf32>
    "tpu.trace_stop"() : () -> ()
    %cst_64 = arith.constant 0.353553385 : f32
    %127 = vector.broadcast %cst_64 : f32 to vector<2x8x8xf32>
    %128 = arith.mulf %126, %127 : vector<2x8x8xf32>
    %129 = vector.broadcast %26 : vector<2x1x8xf32> to vector<2x8x8xf32>
    %130 = arith.addf %128, %129 : vector<2x8x8xf32>
    %cst_65 = arith.constant dense<0xFF800000> : vector<2x8xf32>
    %131 = vector.multi_reduction <maximumf>, %130, %cst_65 [2] : vector<2x8x8xf32> to vector<2x8xf32>
    %132 = vector.shape_cast %131 : vector<2x8xf32> to vector<2x8x1xf32>
    %133 = vector.broadcast %132 : vector<2x8x1xf32> to vector<2x8x8xf32>
    %134 = arith.subf %130, %133 : vector<2x8x8xf32>
    %135 = math.exp %134 : vector<2x8x8xf32>
    %cst_66 = arith.constant dense<0.000000e+00> : vector<2x8xf32>
    %136 = vector.multi_reduction <add>, %135, %cst_66 [2] : vector<2x8x8xf32> to vector<2x8xf32>
    %137 = vector.shape_cast %136 : vector<2x8xf32> to vector<2x8x1xf32>
    %138 = tpu.reciprocal %137 {approx = true} : vector<2x8x1xf32> -> vector<2x8x1xf32>
    %139 = vector.broadcast %138 : vector<2x8x1xf32> to vector<2x8x8xf32>
    %140 = arith.mulf %135, %139 : vector<2x8x8xf32>
    %141 = arith.truncf %140 : vector<2x8x8xf32> to vector<2x8x8xbf16>
    %142 = vector.extract_strided_slice %63 {offsets = [0, 0, 24], sizes = [2, 8, 8], strides = [1, 1, 1]} : vector<2x8x32xbf16> to vector<2x8x8xbf16>
    "tpu.trace_start"() <{level = 10 : i32, message = "bqk,bkd->bqd"}> : () -> ()
    %cst_67 = arith.constant dense<0.000000e+00> : vector<2x8x8xf32>
    %143 = tpu.matmul %141, %142, %cst_67 {dimension_numbers = #tpu.dot_dimension_numbers<[2], [1], [1], [2], [0, 0, 0, 1, 1, 2], [0], [0]>} : vector<2x8x8xbf16>, vector<2x8x8xbf16>, vector<2x8x8xf32> -> vector<2x8x8xf32>
    "tpu.trace_stop"() : () -> ()
    %144 = tpu.concatenate %83, %103, %123, %143 in 2 : vector<2x8x8xf32>, vector<2x8x8xf32>, vector<2x8x8xf32>, vector<2x8x8xf32> -> vector<2x8x32xf32>
    %145 = vector.shape_cast %144 : vector<2x8x32xf32> to vector<16x32xf32>
    %146 = arith.truncf %145 : vector<16x32xf32> to vector<16x32xbf16>
    %cst_68 = arith.constant dense<0.000000e+00> : vector<16x32xf32>
    %147 = tpu.matmul %146, %32, %cst_68 {dimension_numbers = #tpu.dot_dimension_numbers<[1], [0], [0], [1], [0, 0, 1, 1], [], []>} : vector<16x32xbf16>, vector<32x32xbf16>, vector<16x32xf32> -> vector<16x32xf32>
    %148 = vector.broadcast %34 : vector<1x32xf32> to vector<16x32xf32>
    %149 = arith.addf %147, %148 : vector<16x32xf32>
    %150 = arith.addf %24, %149 : vector<16x32xf32>
    %cst_69 = arith.constant dense<0.000000e+00> : vector<16xf32>
    %151 = vector.multi_reduction <add>, %150, %cst_69 [1] : vector<16x32xf32> to vector<16xf32>
    %152 = vector.shape_cast %151 : vector<16xf32> to vector<16x1xf32>
    %cst_70 = arith.constant 3.200000e+01 : f32
    %153 = vector.broadcast %cst_70 : f32 to vector<16x1xf32>
    %154 = arith.divf %152, %153 : vector<16x1xf32>
    %155 = vector.broadcast %154 : vector<16x1xf32> to vector<16x32xf32>
    %156 = arith.subf %150, %155 : vector<16x32xf32>
    %157 = arith.mulf %156, %156 : vector<16x32xf32>
    %cst_71 = arith.constant dense<0.000000e+00> : vector<16xf32>
    %158 = vector.multi_reduction <add>, %157, %cst_71 [1] : vector<16x32xf32> to vector<16xf32>
    %159 = vector.shape_cast %158 : vector<16xf32> to vector<16x1xf32>
    %cst_72 = arith.constant 3.200000e+01 : f32
    %160 = vector.broadcast %cst_72 : f32 to vector<16x1xf32>
    %161 = arith.divf %159, %160 : vector<16x1xf32>
    %162 = vector.broadcast %154 : vector<16x1xf32> to vector<16x32xf32>
    %163 = arith.subf %150, %162 : vector<16x32xf32>
    %cst_73 = arith.constant 9.99999996E-13 : f32
    %164 = vector.broadcast %cst_73 : f32 to vector<16x1xf32>
    %165 = arith.addf %161, %164 : vector<16x1xf32>
    %166 = math.rsqrt %165 : vector<16x1xf32>
    %167 = vector.broadcast %166 : vector<16x1xf32> to vector<16x32xf32>
    %168 = arith.mulf %163, %167 : vector<16x32xf32>
    %169 = vector.broadcast %36 : vector<1x32xf32> to vector<16x32xf32>
    %170 = arith.mulf %168, %169 : vector<16x32xf32>
    %171 = vector.broadcast %38 : vector<1x32xf32> to vector<16x32xf32>
    %172 = arith.addf %170, %171 : vector<16x32xf32>
    %173 = arith.truncf %172 : vector<16x32xf32> to vector<16x32xbf16>
    %cst_74 = arith.constant dense<0.000000e+00> : vector<16x64xf32>
    %174 = tpu.matmul %173, %40, %cst_74 {dimension_numbers = #tpu.dot_dimension_numbers<[1], [0], [0], [1], [0, 0, 1, 1], [], []>} : vector<16x32xbf16>, vector<32x64xbf16>, vector<16x64xf32> -> vector<16x64xf32>
    %175 = vector.broadcast %42 : vector<1x64xf32> to vector<16x64xf32>
    %176 = arith.addf %174, %175 : vector<16x64xf32>
    %cst_75 = arith.constant 5.000000e-01 : f32
    %177 = vector.broadcast %cst_75 : f32 to vector<16x64xf32>
    %178 = arith.mulf %177, %176 : vector<16x64xf32>
    %cst_76 = arith.constant 4.471500e-02 : f32
    %179 = vector.broadcast %cst_76 : f32 to vector<16x64xf32>
    %180 = arith.mulf %179, %176 : vector<16x64xf32>
    %181 = arith.mulf %180, %176 : vector<16x64xf32>
    %182 = arith.mulf %181, %176 : vector<16x64xf32>
    %183 = arith.addf %176, %182 : vector<16x64xf32>
    %cst_77 = arith.constant 0.797884583 : f32
    %184 = vector.broadcast %cst_77 : f32 to vector<16x64xf32>
    %185 = arith.mulf %184, %183 : vector<16x64xf32>
    %186 = math.tanh %185 : vector<16x64xf32>
    %cst_78 = arith.constant 1.000000e+00 : f32
    %187 = vector.broadcast %cst_78 : f32 to vector<16x64xf32>
    %188 = arith.addf %187, %186 : vector<16x64xf32>
    %189 = arith.mulf %178, %188 : vector<16x64xf32>
    %190 = arith.truncf %189 : vector<16x64xf32> to vector<16x64xbf16>
    %cst_79 = arith.constant dense<0.000000e+00> : vector<16x32xf32>
    %191 = tpu.matmul %190, %44, %cst_79 {dimension_numbers = #tpu.dot_dimension_numbers<[1], [0], [0], [1], [0, 0, 1, 1], [], []>} : vector<16x64xbf16>, vector<64x32xbf16>, vector<16x32xf32> -> vector<16x32xf32>
    %192 = vector.broadcast %46 : vector<1x32xf32> to vector<16x32xf32>
    %193 = arith.addf %191, %192 : vector<16x32xf32>
    %194 = arith.addf %172, %193 : vector<16x32xf32>
    %cst_80 = arith.constant dense<0.000000e+00> : vector<16xf32>
    %195 = vector.multi_reduction <add>, %194, %cst_80 [1] : vector<16x32xf32> to vector<16xf32>
    %196 = vector.shape_cast %195 : vector<16xf32> to vector<16x1xf32>
    %cst_81 = arith.constant 3.200000e+01 : f32
    %197 = vector.broadcast %cst_81 : f32 to vector<16x1xf32>
    %198 = arith.divf %196, %197 : vector<16x1xf32>
    %199 = vector.broadcast %198 : vector<16x1xf32> to vector<16x32xf32>
    %200 = arith.subf %194, %199 : vector<16x32xf32>
    %201 = arith.mulf %200, %200 : vector<16x32xf32>
    %cst_82 = arith.constant dense<0.000000e+00> : vector<16xf32>
    %202 = vector.multi_reduction <add>, %201, %cst_82 [1] : vector<16x32xf32> to vector<16xf32>
    %203 = vector.shape_cast %202 : vector<16xf32> to vector<16x1xf32>
    %cst_83 = arith.constant 3.200000e+01 : f32
    %204 = vector.broadcast %cst_83 : f32 to vector<16x1xf32>
    %205 = arith.divf %203, %204 : vector<16x1xf32>
    %206 = vector.broadcast %198 : vector<16x1xf32> to vector<16x32xf32>
    %207 = arith.subf %194, %206 : vector<16x32xf32>
    %cst_84 = arith.constant 9.99999996E-13 : f32
    %208 = vector.broadcast %cst_84 : f32 to vector<16x1xf32>
    %209 = arith.addf %205, %208 : vector<16x1xf32>
    %210 = math.rsqrt %209 : vector<16x1xf32>
    %211 = vector.broadcast %210 : vector<16x1xf32> to vector<16x32xf32>
    %212 = arith.mulf %207, %211 : vector<16x32xf32>
    %213 = vector.broadcast %48 : vector<1x32xf32> to vector<16x32xf32>
    %214 = arith.mulf %212, %213 : vector<16x32xf32>
    %215 = vector.broadcast %50 : vector<1x32xf32> to vector<16x32xf32>
    %216 = arith.addf %214, %215 : vector<16x32xf32>
    %c1 = arith.constant 1 : index
    %c0_85 = arith.constant 0 : index
    %c0_86 = arith.constant 0 : index
    %217 = vector.load %arg4[%c1, %c0_85, %c0_86] : memref<2x32x96xbf16, #tpu.memory_space<vmem>>, vector<1x32x96xbf16>
    %218 = vector.shape_cast %217 : vector<1x32x96xbf16> to vector<32x96xbf16>
    %c1_87 = arith.constant 1 : index
    %c0_88 = arith.constant 0 : index
    %c0_89 = arith.constant 0 : index
    %219 = vector.load %arg5[%c1_87, %c0_88, %c0_89] : memref<2x1x96xf32, #tpu.memory_space<vmem>>, vector<1x1x96xf32>
    %220 = vector.shape_cast %219 : vector<1x1x96xf32> to vector<1x96xf32>
    %c1_90 = arith.constant 1 : index
    %c0_91 = arith.constant 0 : index
    %c0_92 = arith.constant 0 : index
    %221 = vector.load %arg6[%c1_90, %c0_91, %c0_92] : memref<2x32x32xbf16, #tpu.memory_space<vmem>>, vector<1x32x32xbf16>
    %222 = vector.shape_cast %221 : vector<1x32x32xbf16> to vector<32x32xbf16>
    %c1_93 = arith.constant 1 : index
    %c0_94 = arith.constant 0 : index
    %c0_95 = arith.constant 0 : index
    %223 = vector.load %arg7[%c1_93, %c0_94, %c0_95] : memref<2x1x32xf32, #tpu.memory_space<vmem>>, vector<1x1x32xf32>
    %224 = vector.shape_cast %223 : vector<1x1x32xf32> to vector<1x32xf32>
    %c1_96 = arith.constant 1 : index
    %c0_97 = arith.constant 0 : index
    %c0_98 = arith.constant 0 : index
    %225 = vector.load %arg8[%c1_96, %c0_97, %c0_98] : memref<2x1x32xf32, #tpu.memory_space<vmem>>, vector<1x1x32xf32>
    %226 = vector.shape_cast %225 : vector<1x1x32xf32> to vector<1x32xf32>
    %c1_99 = arith.constant 1 : index
    %c0_100 = arith.constant 0 : index
    %c0_101 = arith.constant 0 : index
    %227 = vector.load %arg9[%c1_99, %c0_100, %c0_101] : memref<2x1x32xf32, #tpu.memory_space<vmem>>, vector<1x1x32xf32>
    %228 = vector.shape_cast %227 : vector<1x1x32xf32> to vector<1x32xf32>
    %c1_102 = arith.constant 1 : index
    %c0_103 = arith.constant 0 : index
    %c0_104 = arith.constant 0 : index
    %229 = vector.load %arg10[%c1_102, %c0_103, %c0_104] : memref<2x32x64xbf16, #tpu.memory_space<vmem>>, vector<1x32x64xbf16>
    %230 = vector.shape_cast %229 : vector<1x32x64xbf16> to vector<32x64xbf16>
    %c1_105 = arith.constant 1 : index
    %c0_106 = arith.constant 0 : index
    %c0_107 = arith.constant 0 : index
    %231 = vector.load %arg11[%c1_105, %c0_106, %c0_107] : memref<2x1x64xf32, #tpu.memory_space<vmem>>, vector<1x1x64xf32>
    %232 = vector.shape_cast %231 : vector<1x1x64xf32> to vector<1x64xf32>
    %c1_108 = arith.constant 1 : index
    %c0_109 = arith.constant 0 : index
    %c0_110 = arith.constant 0 : index
    %233 = vector.load %arg12[%c1_108, %c0_109, %c0_110] : memref<2x64x32xbf16, #tpu.memory_space<vmem>>, vector<1x64x32xbf16>
    %234 = vector.shape_cast %233 : vector<1x64x32xbf16> to vector<64x32xbf16>
    %c1_111 = arith.constant 1 : index
    %c0_112 = arith.constant 0 : index
    %c0_113 = arith.constant 0 : index
    %235 = vector.load %arg13[%c1_111, %c0_112, %c0_113] : memref<2x1x32xf32, #tpu.memory_space<vmem>>, vector<1x1x32xf32>
    %236 = vector.shape_cast %235 : vector<1x1x32xf32> to vector<1x32xf32>
    %c1_114 = arith.constant 1 : index
    %c0_115 = arith.constant 0 : index
    %c0_116 = arith.constant 0 : index
    %237 = vector.load %arg14[%c1_114, %c0_115, %c0_116] : memref<2x1x32xf32, #tpu.memory_space<vmem>>, vector<1x1x32xf32>
    %238 = vector.shape_cast %237 : vector<1x1x32xf32> to vector<1x32xf32>
    %c1_117 = arith.constant 1 : index
    %c0_118 = arith.constant 0 : index
    %c0_119 = arith.constant 0 : index
    %239 = vector.load %arg15[%c1_117, %c0_118, %c0_119] : memref<2x1x32xf32, #tpu.memory_space<vmem>>, vector<1x1x32xf32>
    %240 = vector.shape_cast %239 : vector<1x1x32xf32> to vector<1x32xf32>
    %241 = arith.truncf %216 : vector<16x32xf32> to vector<16x32xbf16>
    %cst_120 = arith.constant dense<0.000000e+00> : vector<16x96xf32>
    %242 = tpu.matmul %241, %218, %cst_120 {dimension_numbers = #tpu.dot_dimension_numbers<[1], [0], [0], [1], [0, 0, 1, 1], [], []>} : vector<16x32xbf16>, vector<32x96xbf16>, vector<16x96xf32> -> vector<16x96xf32>
    %243 = vector.broadcast %220 : vector<1x96xf32> to vector<16x96xf32>
    %244 = arith.addf %242, %243 : vector<16x96xf32>
    %245 = vector.extract_strided_slice %244 {offsets = [0, 0], sizes = [16, 32], strides = [1, 1]} : vector<16x96xf32> to vector<16x32xf32>
    %246 = vector.shape_cast %245 : vector<16x32xf32> to vector<2x8x32xf32>
    %247 = arith.truncf %246 : vector<2x8x32xf32> to vector<2x8x32xbf16>
    %248 = vector.extract_strided_slice %244 {offsets = [0, 32], sizes = [16, 32], strides = [1, 1]} : vector<16x96xf32> to vector<16x32xf32>
    %249 = vector.shape_cast %248 : vector<16x32xf32> to vector<2x8x32xf32>
    %250 = arith.truncf %249 : vector<2x8x32xf32> to vector<2x8x32xbf16>
    %251 = vector.extract_strided_slice %244 {offsets = [0, 64], sizes = [16, 32], strides = [1, 1]} : vector<16x96xf32> to vector<16x32xf32>
    %252 = vector.shape_cast %251 : vector<16x32xf32> to vector<2x8x32xf32>
    %253 = arith.truncf %252 : vector<2x8x32xf32> to vector<2x8x32xbf16>
    %254 = vector.extract_strided_slice %247 {offsets = [0, 0, 0], sizes = [2, 8, 8], strides = [1, 1, 1]} : vector<2x8x32xbf16> to vector<2x8x8xbf16>
    %255 = vector.extract_strided_slice %250 {offsets = [0, 0, 0], sizes = [2, 8, 8], strides = [1, 1, 1]} : vector<2x8x32xbf16> to vector<2x8x8xbf16>
    "tpu.trace_start"() <{level = 10 : i32, message = "bqd,bkd->bqk"}> : () -> ()
    %cst_121 = arith.constant dense<0.000000e+00> : vector<2x8x8xf32>
    %256 = tpu.matmul %254, %255, %cst_121 {dimension_numbers = #tpu.dot_dimension_numbers<[2], [2], [1], [1], [0, 0, 0, 1, 1, 1], [0], [0]>} : vector<2x8x8xbf16>, vector<2x8x8xbf16>, vector<2x8x8xf32> -> vector<2x8x8xf32>
    "tpu.trace_stop"() : () -> ()
    %cst_122 = arith.constant 0.353553385 : f32
    %257 = vector.broadcast %cst_122 : f32 to vector<2x8x8xf32>
    %258 = arith.mulf %256, %257 : vector<2x8x8xf32>
    %259 = vector.broadcast %26 : vector<2x1x8xf32> to vector<2x8x8xf32>
    %260 = arith.addf %258, %259 : vector<2x8x8xf32>
    %cst_123 = arith.constant dense<0xFF800000> : vector<2x8xf32>
    %261 = vector.multi_reduction <maximumf>, %260, %cst_123 [2] : vector<2x8x8xf32> to vector<2x8xf32>
    %262 = vector.shape_cast %261 : vector<2x8xf32> to vector<2x8x1xf32>
    %263 = vector.broadcast %262 : vector<2x8x1xf32> to vector<2x8x8xf32>
    %264 = arith.subf %260, %263 : vector<2x8x8xf32>
    %265 = math.exp %264 : vector<2x8x8xf32>
    %cst_124 = arith.constant dense<0.000000e+00> : vector<2x8xf32>
    %266 = vector.multi_reduction <add>, %265, %cst_124 [2] : vector<2x8x8xf32> to vector<2x8xf32>
    %267 = vector.shape_cast %266 : vector<2x8xf32> to vector<2x8x1xf32>
    %268 = tpu.reciprocal %267 {approx = true} : vector<2x8x1xf32> -> vector<2x8x1xf32>
    %269 = vector.broadcast %268 : vector<2x8x1xf32> to vector<2x8x8xf32>
    %270 = arith.mulf %265, %269 : vector<2x8x8xf32>
    %271 = arith.truncf %270 : vector<2x8x8xf32> to vector<2x8x8xbf16>
    %272 = vector.extract_strided_slice %253 {offsets = [0, 0, 0], sizes = [2, 8, 8], strides = [1, 1, 1]} : vector<2x8x32xbf16> to vector<2x8x8xbf16>
    "tpu.trace_start"() <{level = 10 : i32, message = "bqk,bkd->bqd"}> : () -> ()
    %cst_125 = arith.constant dense<0.000000e+00> : vector<2x8x8xf32>
    %273 = tpu.matmul %271, %272, %cst_125 {dimension_numbers = #tpu.dot_dimension_numbers<[2], [1], [1], [2], [0, 0, 0, 1, 1, 2], [0], [0]>} : vector<2x8x8xbf16>, vector<2x8x8xbf16>, vector<2x8x8xf32> -> vector<2x8x8xf32>
    "tpu.trace_stop"() : () -> ()
    %274 = vector.extract_strided_slice %247 {offsets = [0, 0, 8], sizes = [2, 8, 8], strides = [1, 1, 1]} : vector<2x8x32xbf16> to vector<2x8x8xbf16>
    %275 = vector.extract_strided_slice %250 {offsets = [0, 0, 8], sizes = [2, 8, 8], strides = [1, 1, 1]} : vector<2x8x32xbf16> to vector<2x8x8xbf16>
    "tpu.trace_start"() <{level = 10 : i32, message = "bqd,bkd->bqk"}> : () -> ()
    %cst_126 = arith.constant dense<0.000000e+00> : vector<2x8x8xf32>
    %276 = tpu.matmul %274, %275, %cst_126 {dimension_numbers = #tpu.dot_dimension_numbers<[2], [2], [1], [1], [0, 0, 0, 1, 1, 1], [0], [0]>} : vector<2x8x8xbf16>, vector<2x8x8xbf16>, vector<2x8x8xf32> -> vector<2x8x8xf32>
    "tpu.trace_stop"() : () -> ()
    %cst_127 = arith.constant 0.353553385 : f32
    %277 = vector.broadcast %cst_127 : f32 to vector<2x8x8xf32>
    %278 = arith.mulf %276, %277 : vector<2x8x8xf32>
    %279 = vector.broadcast %26 : vector<2x1x8xf32> to vector<2x8x8xf32>
    %280 = arith.addf %278, %279 : vector<2x8x8xf32>
    %cst_128 = arith.constant dense<0xFF800000> : vector<2x8xf32>
    %281 = vector.multi_reduction <maximumf>, %280, %cst_128 [2] : vector<2x8x8xf32> to vector<2x8xf32>
    %282 = vector.shape_cast %281 : vector<2x8xf32> to vector<2x8x1xf32>
    %283 = vector.broadcast %282 : vector<2x8x1xf32> to vector<2x8x8xf32>
    %284 = arith.subf %280, %283 : vector<2x8x8xf32>
    %285 = math.exp %284 : vector<2x8x8xf32>
    %cst_129 = arith.constant dense<0.000000e+00> : vector<2x8xf32>
    %286 = vector.multi_reduction <add>, %285, %cst_129 [2] : vector<2x8x8xf32> to vector<2x8xf32>
    %287 = vector.shape_cast %286 : vector<2x8xf32> to vector<2x8x1xf32>
    %288 = tpu.reciprocal %287 {approx = true} : vector<2x8x1xf32> -> vector<2x8x1xf32>
    %289 = vector.broadcast %288 : vector<2x8x1xf32> to vector<2x8x8xf32>
    %290 = arith.mulf %285, %289 : vector<2x8x8xf32>
    %291 = arith.truncf %290 : vector<2x8x8xf32> to vector<2x8x8xbf16>
    %292 = vector.extract_strided_slice %253 {offsets = [0, 0, 8], sizes = [2, 8, 8], strides = [1, 1, 1]} : vector<2x8x32xbf16> to vector<2x8x8xbf16>
    "tpu.trace_start"() <{level = 10 : i32, message = "bqk,bkd->bqd"}> : () -> ()
    %cst_130 = arith.constant dense<0.000000e+00> : vector<2x8x8xf32>
    %293 = tpu.matmul %291, %292, %cst_130 {dimension_numbers = #tpu.dot_dimension_numbers<[2], [1], [1], [2], [0, 0, 0, 1, 1, 2], [0], [0]>} : vector<2x8x8xbf16>, vector<2x8x8xbf16>, vector<2x8x8xf32> -> vector<2x8x8xf32>
    "tpu.trace_stop"() : () -> ()
    %294 = vector.extract_strided_slice %247 {offsets = [0, 0, 16], sizes = [2, 8, 8], strides = [1, 1, 1]} : vector<2x8x32xbf16> to vector<2x8x8xbf16>
    %295 = vector.extract_strided_slice %250 {offsets = [0, 0, 16], sizes = [2, 8, 8], strides = [1, 1, 1]} : vector<2x8x32xbf16> to vector<2x8x8xbf16>
    "tpu.trace_start"() <{level = 10 : i32, message = "bqd,bkd->bqk"}> : () -> ()
    %cst_131 = arith.constant dense<0.000000e+00> : vector<2x8x8xf32>
    %296 = tpu.matmul %294, %295, %cst_131 {dimension_numbers = #tpu.dot_dimension_numbers<[2], [2], [1], [1], [0, 0, 0, 1, 1, 1], [0], [0]>} : vector<2x8x8xbf16>, vector<2x8x8xbf16>, vector<2x8x8xf32> -> vector<2x8x8xf32>
    "tpu.trace_stop"() : () -> ()
    %cst_132 = arith.constant 0.353553385 : f32
    %297 = vector.broadcast %cst_132 : f32 to vector<2x8x8xf32>
    %298 = arith.mulf %296, %297 : vector<2x8x8xf32>
    %299 = vector.broadcast %26 : vector<2x1x8xf32> to vector<2x8x8xf32>
    %300 = arith.addf %298, %299 : vector<2x8x8xf32>
    %cst_133 = arith.constant dense<0xFF800000> : vector<2x8xf32>
    %301 = vector.multi_reduction <maximumf>, %300, %cst_133 [2] : vector<2x8x8xf32> to vector<2x8xf32>
    %302 = vector.shape_cast %301 : vector<2x8xf32> to vector<2x8x1xf32>
    %303 = vector.broadcast %302 : vector<2x8x1xf32> to vector<2x8x8xf32>
    %304 = arith.subf %300, %303 : vector<2x8x8xf32>
    %305 = math.exp %304 : vector<2x8x8xf32>
    %cst_134 = arith.constant dense<0.000000e+00> : vector<2x8xf32>
    %306 = vector.multi_reduction <add>, %305, %cst_134 [2] : vector<2x8x8xf32> to vector<2x8xf32>
    %307 = vector.shape_cast %306 : vector<2x8xf32> to vector<2x8x1xf32>
    %308 = tpu.reciprocal %307 {approx = true} : vector<2x8x1xf32> -> vector<2x8x1xf32>
    %309 = vector.broadcast %308 : vector<2x8x1xf32> to vector<2x8x8xf32>
    %310 = arith.mulf %305, %309 : vector<2x8x8xf32>
    %311 = arith.truncf %310 : vector<2x8x8xf32> to vector<2x8x8xbf16>
    %312 = vector.extract_strided_slice %253 {offsets = [0, 0, 16], sizes = [2, 8, 8], strides = [1, 1, 1]} : vector<2x8x32xbf16> to vector<2x8x8xbf16>
    "tpu.trace_start"() <{level = 10 : i32, message = "bqk,bkd->bqd"}> : () -> ()
    %cst_135 = arith.constant dense<0.000000e+00> : vector<2x8x8xf32>
    %313 = tpu.matmul %311, %312, %cst_135 {dimension_numbers = #tpu.dot_dimension_numbers<[2], [1], [1], [2], [0, 0, 0, 1, 1, 2], [0], [0]>} : vector<2x8x8xbf16>, vector<2x8x8xbf16>, vector<2x8x8xf32> -> vector<2x8x8xf32>
    "tpu.trace_stop"() : () -> ()
    %314 = vector.extract_strided_slice %247 {offsets = [0, 0, 24], sizes = [2, 8, 8], strides = [1, 1, 1]} : vector<2x8x32xbf16> to vector<2x8x8xbf16>
    %315 = vector.extract_strided_slice %250 {offsets = [0, 0, 24], sizes = [2, 8, 8], strides = [1, 1, 1]} : vector<2x8x32xbf16> to vector<2x8x8xbf16>
    "tpu.trace_start"() <{level = 10 : i32, message = "bqd,bkd->bqk"}> : () -> ()
    %cst_136 = arith.constant dense<0.000000e+00> : vector<2x8x8xf32>
    %316 = tpu.matmul %314, %315, %cst_136 {dimension_numbers = #tpu.dot_dimension_numbers<[2], [2], [1], [1], [0, 0, 0, 1, 1, 1], [0], [0]>} : vector<2x8x8xbf16>, vector<2x8x8xbf16>, vector<2x8x8xf32> -> vector<2x8x8xf32>
    "tpu.trace_stop"() : () -> ()
    %cst_137 = arith.constant 0.353553385 : f32
    %317 = vector.broadcast %cst_137 : f32 to vector<2x8x8xf32>
    %318 = arith.mulf %316, %317 : vector<2x8x8xf32>
    %319 = vector.broadcast %26 : vector<2x1x8xf32> to vector<2x8x8xf32>
    %320 = arith.addf %318, %319 : vector<2x8x8xf32>
    %cst_138 = arith.constant dense<0xFF800000> : vector<2x8xf32>
    %321 = vector.multi_reduction <maximumf>, %320, %cst_138 [2] : vector<2x8x8xf32> to vector<2x8xf32>
    %322 = vector.shape_cast %321 : vector<2x8xf32> to vector<2x8x1xf32>
    %323 = vector.broadcast %322 : vector<2x8x1xf32> to vector<2x8x8xf32>
    %324 = arith.subf %320, %323 : vector<2x8x8xf32>
    %325 = math.exp %324 : vector<2x8x8xf32>
    %cst_139 = arith.constant dense<0.000000e+00> : vector<2x8xf32>
    %326 = vector.multi_reduction <add>, %325, %cst_139 [2] : vector<2x8x8xf32> to vector<2x8xf32>
    %327 = vector.shape_cast %326 : vector<2x8xf32> to vector<2x8x1xf32>
    %328 = tpu.reciprocal %327 {approx = true} : vector<2x8x1xf32> -> vector<2x8x1xf32>
    %329 = vector.broadcast %328 : vector<2x8x1xf32> to vector<2x8x8xf32>
    %330 = arith.mulf %325, %329 : vector<2x8x8xf32>
    %331 = arith.truncf %330 : vector<2x8x8xf32> to vector<2x8x8xbf16>
    %332 = vector.extract_strided_slice %253 {offsets = [0, 0, 24], sizes = [2, 8, 8], strides = [1, 1, 1]} : vector<2x8x32xbf16> to vector<2x8x8xbf16>
    "tpu.trace_start"() <{level = 10 : i32, message = "bqk,bkd->bqd"}> : () -> ()
    %cst_140 = arith.constant dense<0.000000e+00> : vector<2x8x8xf32>
    %333 = tpu.matmul %331, %332, %cst_140 {dimension_numbers = #tpu.dot_dimension_numbers<[2], [1], [1], [2], [0, 0, 0, 1, 1, 2], [0], [0]>} : vector<2x8x8xbf16>, vector<2x8x8xbf16>, vector<2x8x8xf32> -> vector<2x8x8xf32>
    "tpu.trace_stop"() : () -> ()
    %334 = tpu.concatenate %273, %293, %313, %333 in 2 : vector<2x8x8xf32>, vector<2x8x8xf32>, vector<2x8x8xf32>, vector<2x8x8xf32> -> vector<2x8x32xf32>
    %335 = vector.shape_cast %334 : vector<2x8x32xf32> to vector<16x32xf32>
    %336 = arith.truncf %335 : vector<16x32xf32> to vector<16x32xbf16>
    %cst_141 = arith.constant dense<0.000000e+00> : vector<16x32xf32>
    %337 = tpu.matmul %336, %222, %cst_141 {dimension_numbers = #tpu.dot_dimension_numbers<[1], [0], [0], [1], [0, 0, 1, 1], [], []>} : vector<16x32xbf16>, vector<32x32xbf16>, vector<16x32xf32> -> vector<16x32xf32>
    %338 = vector.broadcast %224 : vector<1x32xf32> to vector<16x32xf32>
    %339 = arith.addf %337, %338 : vector<16x32xf32>
    %340 = arith.addf %216, %339 : vector<16x32xf32>
    %cst_142 = arith.constant dense<0.000000e+00> : vector<16xf32>
    %341 = vector.multi_reduction <add>, %340, %cst_142 [1] : vector<16x32xf32> to vector<16xf32>
    %342 = vector.shape_cast %341 : vector<16xf32> to vector<16x1xf32>
    %cst_143 = arith.constant 3.200000e+01 : f32
    %343 = vector.broadcast %cst_143 : f32 to vector<16x1xf32>
    %344 = arith.divf %342, %343 : vector<16x1xf32>
    %345 = vector.broadcast %344 : vector<16x1xf32> to vector<16x32xf32>
    %346 = arith.subf %340, %345 : vector<16x32xf32>
    %347 = arith.mulf %346, %346 : vector<16x32xf32>
    %cst_144 = arith.constant dense<0.000000e+00> : vector<16xf32>
    %348 = vector.multi_reduction <add>, %347, %cst_144 [1] : vector<16x32xf32> to vector<16xf32>
    %349 = vector.shape_cast %348 : vector<16xf32> to vector<16x1xf32>
    %cst_145 = arith.constant 3.200000e+01 : f32
    %350 = vector.broadcast %cst_145 : f32 to vector<16x1xf32>
    %351 = arith.divf %349, %350 : vector<16x1xf32>
    %352 = vector.broadcast %344 : vector<16x1xf32> to vector<16x32xf32>
    %353 = arith.subf %340, %352 : vector<16x32xf32>
    %cst_146 = arith.constant 9.99999996E-13 : f32
    %354 = vector.broadcast %cst_146 : f32 to vector<16x1xf32>
    %355 = arith.addf %351, %354 : vector<16x1xf32>
    %356 = math.rsqrt %355 : vector<16x1xf32>
    %357 = vector.broadcast %356 : vector<16x1xf32> to vector<16x32xf32>
    %358 = arith.mulf %353, %357 : vector<16x32xf32>
    %359 = vector.broadcast %226 : vector<1x32xf32> to vector<16x32xf32>
    %360 = arith.mulf %358, %359 : vector<16x32xf32>
    %361 = vector.broadcast %228 : vector<1x32xf32> to vector<16x32xf32>
    %362 = arith.addf %360, %361 : vector<16x32xf32>
    %363 = arith.truncf %362 : vector<16x32xf32> to vector<16x32xbf16>
    %cst_147 = arith.constant dense<0.000000e+00> : vector<16x64xf32>
    %364 = tpu.matmul %363, %230, %cst_147 {dimension_numbers = #tpu.dot_dimension_numbers<[1], [0], [0], [1], [0, 0, 1, 1], [], []>} : vector<16x32xbf16>, vector<32x64xbf16>, vector<16x64xf32> -> vector<16x64xf32>
    %365 = vector.broadcast %232 : vector<1x64xf32> to vector<16x64xf32>
    %366 = arith.addf %364, %365 : vector<16x64xf32>
    %cst_148 = arith.constant 5.000000e-01 : f32
    %367 = vector.broadcast %cst_148 : f32 to vector<16x64xf32>
    %368 = arith.mulf %367, %366 : vector<16x64xf32>
    %cst_149 = arith.constant 4.471500e-02 : f32
    %369 = vector.broadcast %cst_149 : f32 to vector<16x64xf32>
    %370 = arith.mulf %369, %366 : vector<16x64xf32>
    %371 = arith.mulf %370, %366 : vector<16x64xf32>
    %372 = arith.mulf %371, %366 : vector<16x64xf32>
    %373 = arith.addf %366, %372 : vector<16x64xf32>
    %cst_150 = arith.constant 0.797884583 : f32
    %374 = vector.broadcast %cst_150 : f32 to vector<16x64xf32>
    %375 = arith.mulf %374, %373 : vector<16x64xf32>
    %376 = math.tanh %375 : vector<16x64xf32>
    %cst_151 = arith.constant 1.000000e+00 : f32
    %377 = vector.broadcast %cst_151 : f32 to vector<16x64xf32>
    %378 = arith.addf %377, %376 : vector<16x64xf32>
    %379 = arith.mulf %368, %378 : vector<16x64xf32>
    %380 = arith.truncf %379 : vector<16x64xf32> to vector<16x64xbf16>
    %cst_152 = arith.constant dense<0.000000e+00> : vector<16x32xf32>
    %381 = tpu.matmul %380, %234, %cst_152 {dimension_numbers = #tpu.dot_dimension_numbers<[1], [0], [0], [1], [0, 0, 1, 1], [], []>} : vector<16x64xbf16>, vector<64x32xbf16>, vector<16x32xf32> -> vector<16x32xf32>
    %382 = vector.broadcast %236 : vector<1x32xf32> to vector<16x32xf32>
    %383 = arith.addf %381, %382 : vector<16x32xf32>
    %384 = arith.addf %362, %383 : vector<16x32xf32>
    %cst_153 = arith.constant dense<0.000000e+00> : vector<16xf32>
    %385 = vector.multi_reduction <add>, %384, %cst_153 [1] : vector<16x32xf32> to vector<16xf32>
    %386 = vector.shape_cast %385 : vector<16xf32> to vector<16x1xf32>
    %cst_154 = arith.constant 3.200000e+01 : f32
    %387 = vector.broadcast %cst_154 : f32 to vector<16x1xf32>
    %388 = arith.divf %386, %387 : vector<16x1xf32>
    %389 = vector.broadcast %388 : vector<16x1xf32> to vector<16x32xf32>
    %390 = arith.subf %384, %389 : vector<16x32xf32>
    %391 = arith.mulf %390, %390 : vector<16x32xf32>
    %cst_155 = arith.constant dense<0.000000e+00> : vector<16xf32>
    %392 = vector.multi_reduction <add>, %391, %cst_155 [1] : vector<16x32xf32> to vector<16xf32>
    %393 = vector.shape_cast %392 : vector<16xf32> to vector<16x1xf32>
    %cst_156 = arith.constant 3.200000e+01 : f32
    %394 = vector.broadcast %cst_156 : f32 to vector<16x1xf32>
    %395 = arith.divf %393, %394 : vector<16x1xf32>
    %396 = vector.broadcast %388 : vector<16x1xf32> to vector<16x32xf32>
    %397 = arith.subf %384, %396 : vector<16x32xf32>
    %cst_157 = arith.constant 9.99999996E-13 : f32
    %398 = vector.broadcast %cst_157 : f32 to vector<16x1xf32>
    %399 = arith.addf %395, %398 : vector<16x1xf32>
    %400 = math.rsqrt %399 : vector<16x1xf32>
    %401 = vector.broadcast %400 : vector<16x1xf32> to vector<16x32xf32>
    %402 = arith.mulf %397, %401 : vector<16x32xf32>
    %403 = vector.broadcast %238 : vector<1x32xf32> to vector<16x32xf32>
    %404 = arith.mulf %402, %403 : vector<16x32xf32>
    %405 = vector.broadcast %240 : vector<1x32xf32> to vector<16x32xf32>
    %406 = arith.addf %404, %405 : vector<16x32xf32>
    %c0_158 = arith.constant 0 : index
    %c0_159 = arith.constant 0 : index
    %407 = vector.load %arg16[%c0_158, %c0_159] : memref<16x32xf32, #tpu.memory_space<vmem>>, vector<16x32xf32>
    tpu.vector_store %arg16[%c0_158, %c0_159], %406 {strides = array<i32>} : memref<16x32xf32, #tpu.memory_space<vmem>>, vector<16x32xf32>,
    return
  }
}

</mosaic_0001>

<bundles_post_ra>
// kernel: bert_classifier_forward.1
= control target key start
LH: loop header
LB: loop body
LE: loop exit
PB: predicated region body
PF: predicated region fallthrough
CT: control target
= control target key end

     0   :  { %vm58_vm0 = vcmask 261120   ;;  %v3429_v14 = vmov 0.0   ;;  %vm3430_vm1 = vmmov 0   ;;  %vm222_vm2 = vcmask 64512   ;;  %s3434_s22 = smov 88   ;;  %s3436_s24 = smov 56   ;;  %s4102_s0 = inlined_call_operand.vmem [shape: f32[16,32], index: 0, kind: input, shape index: {}]   ;;  %s4103_s4 = inlined_call_operand.vmem [shape: bf16[2,32,96], index: 4, kind: input, shape index: {}]   ;;  %s4104_s2 = inlined_call_operand.vmem [shape: f32[1,32], index: 2, kind: input, shape index: {}]   ;;  %s4105_s3 = inlined_call_operand.vmem [shape: f32[1,32], index: 3, kind: input, shape index: {}]   ;;  %s4106_s5 = inlined_call_operand.vmem [shape: f32[2,1,96], index: 5, kind: input, shape index: {}]   ;;  %s4107_s1 = inlined_call_operand.vmem [shape: f32[2,8], index: 1, kind: input, shape index: {}]   ;;  %s4108_s6 = inlined_call_operand.vmem [shape: bf16[2,32,32], index: 6, kind: input, shape index: {}]   ;;  %s4109_s7 = inlined_call_operand.vmem [shape: f32[2,1,32], index: 7, kind: input, shape index: {}]   ;;  %s4110_s10 = inlined_call_operand.vmem [shape: bf16[2,32,64], index: 10, kind: input, shape index: {}]   ;;  %s4111_s8 = inlined_call_operand.vmem [shape: f32[2,1,32], index: 8, kind: input, shape index: {}]   ;;  %s4112_s9 = inlined_call_operand.vmem [shape: f32[2,1,32], index: 9, kind: input, shape index: {}]   ;;  %s4113_s12 = inlined_call_operand.vmem [shape: bf16[2,64,32], index: 12, kind: input, shape index: {}]   ;;  %s4114_s11 = inlined_call_operand.vmem [shape: f32[2,1,64], index: 11, kind: input, shape index: {}]   ;;  %s4115_s13 = inlined_call_operand.vmem [shape: f32[2,1,32], index: 13, kind: input, shape index: {}]   ;;  %s4116_s14 = inlined_call_operand.vmem [shape: f32[2,1,32], index: 14, kind: input, shape index: {}]   ;;  %s4117_s15 = inlined_call_operand.vmem [shape: f32[2,1,32], index: 15, kind: input, shape index: {}]   ;;  %s4118_s16 = inlined_call_operand.vmem [shape: f32[16,32], index: 16, kind: output, shape index: {}]  }
   0x1   :  { %4125 = sst [smem:[#allocation2_spill]] %s4102_s0  ;;  %3006 = vmatprep.subr.bf16.mxu1 %v3429_v14  ;;  %v3317_v15 = vld [vmem:[%s4103_s4 + $0x8] sm:$0xff]   ;;  %3010 = vmatprep.mubr.msk.bf16.mxu1 %vm3430_vm1, %v3429_v14  ;;  %v3318_v16 = vld [vmem:[%s4103_s4] sm:$0xff]   ;;  %v3432_v47 = vmov 1966171168   ;;  %v115_v49 = vlaneseq  ;;  %vm361_vm3 = vcmask 1043456  }
   0x2   :  { %s4126_s23 = sld [smem:[#allocation2_spill]]  ;;  %3020 = vmatprep.subr.bf16.mxu0 %v3429_v14  ;;  %3022 = vmatprep.mubr.msk.bf16.mxu0 %vm3430_vm1, %v3429_v14  ;;  %v2807_v25 = vld [vmem:[%s4104_s2] ss:$0 sm:$0xff]  ;;  %v113_v48 = vunpack.c.l.s4 %v3432_v47  ;;  %s3437_s25 = smov 80   ;;  %vm1151_vm4 = vcmask 130048   ;;  %vm1154_vm5 = vcmask 195584  }
   0x3   :  { %3007 = vmatpush3.bf16.msra.mxu1 %v3317_v15  ;;  %v2808_v29 = vld [vmem:[%s4105_s3] ss:$0 sm:$0xff]  ;;  %s3431_s3 = smov 96   ;;  %v116_v51 = vshrl.u32 %v115_v49, 7  ;;  %s3438_s26 = smov 112   ;;  %vm1376_vm6 = vcmask 523264  }
   0x4   :  { %3008 = vmatprep.subr.bf16.mxu1 %v3429_v14  ;;  %v2810_v34 = vld [vmem:[%s4106_s5] ss:$0 sm:$0xff]  ;;  %v114_v50 = vunpack.c.0.s8 %v113_v48  ;;  %s3439_s27 = smov 48   ;;  %s3440_s28 = smov 72  }
   0x5   :  { %v2809_v53 = vld.sshfl [vmem:[%s4107_s1] sm:$0x11 pattern:$0x75316420]  ;;  %v322_v55 = vsub.s32 0, %v116_v51  ;;  %s3433_s1 = smov 64  }
   0x6   :  { %v117_v52 = vsub.s32 %v114_v50, %v116_v51  ;;  %v111_v56 = vcombine.high %v2809_v53, %v2809_v53  ;;  %s3441_s29 = smov 104   ;;  %s4123_s30 = smov 40  }
   0x7   :  { %3009 = vmatpush3.bf16.msra.mxu1 %v3318_v16  ;;  %s4122_s0 = smov 8   ;;  %s4121_s17 = smov 16  }
   0x8   :  { %v54_v0 = vld [vmem:[%s4126_s23] sm:$0xff]  ;;  %v55_v1 = vld [vmem:[%s4126_s23 + $0x8] sm:$0xff]  ;;  %3014 = vmatprep.subr.bf16.mxu1 %v3429_v14  ;;  %v118_v54 = vrot.slane %v2809_v53, %v117_v52  ;;  %v125_v58 = vrot.slane %v111_v56, %v117_v52  ;;  %s3435_s23 = smov 120   ;;  %s4120_s21 = smov 24  }
   0x9   :  { %v59_v2 = vsel %vm58_vm0, %v54_v0, 0.0  ;;  %v62_v3 = vsel %vm58_vm0, %v55_v1, 0.0 }
   0xa   :  { %60 = vadd.xlane.f32.xlu0 %v59_v2  ;;  %v3596_v57 = vrot.slane %v118_v54, %v322_v55  ;;  %v3599_v63 = vrot.slane %v125_v58, %v322_v55 }
   0xe   :  { %63 = vadd.xlane.f32.xlu0 %v62_v3 }
  0x93   :  { %v61_v4 = vpop.xlane.xlu0 %60 }
  0x94   :  { %v66_v5 = vmul.f32 0.03125, %v61_v4 }
  0x96   :  { %v68_v6 = vsub.f32 %v54_v0, %v66_v5 }
  0x97   :  { %v64_v7 = vpop.xlane.xlu0 %63 }
  0x98   :  { %v67_v8 = vmul.f32 0.03125, %v64_v7  ;;  %v70_v9 = vmul.f32 %v68_v6, %v68_v6 }
  0x9a   :  { %v69_v10 = vsub.f32 %v55_v1, %v67_v8  ;;  %v72_v11 = vsel %vm58_vm0, %v70_v9, 0.0 }
  0x9b   :  { %73 = vadd.xlane.f32.xlu1 %v72_v11 }
  0x9c   :  { %v71_v12 = vmul.f32 %v69_v10, %v69_v10 }
  0x9e   :  { %v75_v13 = vsel %vm58_vm0, %v71_v12, 0.0 }
  0x9f   :  { %76 = vadd.xlane.f32.xlu1 %v75_v13 }
 0x124   :  { %v74_v17 = vpop.xlane.xlu1 %73 }
 0x125   :  { %v78_v18 = vmul.f32 0.03125, %v74_v17 }
 0x127   :  { %v80_v19 = vadd.f32 1e-12, %v78_v18 }
 0x128   :  { %v77_v20 = vpop.xlane.xlu1 %76 }
 0x129   :  { %3337 = vrsqrt.f32 %v80_v19  ;;  %v79_v21 = vmul.f32 0.03125, %v77_v20 }
 0x12b   :  { %v81_v22 = vadd.f32 1e-12, %v79_v21 }
 0x12d   :  { %3339 = vrsqrt.f32 %v81_v22 }
 0x136   :  { %v3338_v23 = vpop.eup %3337 }
 0x137   :  { %v84_v24 = vmul.f32 %v3338_v23, %v68_v6 }
 0x139   :  { %v92_v28 = vmul.f32 %v2807_v25, %v84_v24 }
 0x13a   :  { %v3340_v26 = vpop.eup %3339 }
 0x13b   :  { %v85_v27 = vmul.f32 %v3340_v26, %v69_v10  ;;  %v3561_v31 = vadd.f32 %v2808_v29, %v92_v28 }
 0x13d   :  { %v93_v30 = vmul.f32 %v2807_v25, %v85_v27 }
 0x13f   :  { %v3563_v32 = vadd.f32 %v2808_v29, %v93_v30 }
 0x141   :  { %v154_v33 = vpack.c.bf16 %v3563_v32, %v3561_v31 }
 0x143   :  { %3011 = vmatmul.mubr.msk.bf16.vlgmr.msra.gmra.mxu1 %vm58_vm0, %v154_v33 }
 0x144   :  { %3016 = vmatprep.mubr.msk.bf16.mxu1 %vm3430_vm1, %v3429_v14 }
 0x203   :  { %v210_v35 = vpop.f32.mrf.mxu1 }
 0x204   :  { %v211_v36 = vadd.f32 %v2810_v34, %v210_v35 }
 0x205   :  { %v3012_v37 = vpop.f32.mrf.mxu1 }
 0x206   :  { %v3573_v38 = vpack.c.bf16 %v211_v36, %v211_v36 }
 0x207   :  { %v213_v39 = vpop.f32.mrf.mxu1 }
 0x208   :  { %v214_v40 = vadd.f32 %v2810_v34, %v213_v39  ;;  %220 = vrot.lane.b32.xlu0 %v3573_v38, %s3431_s3 }
 0x209   :  { %v3013_v41 = vpop.f32.mrf.mxu1 }
 0x20a   :  { %v3577_v42 = vpack.c.bf16 %v214_v40, %v214_v40 }
 0x20c   :  { %270 = vrot.lane.b32.xlu1 %v3577_v42, %s3431_s3 }
 0x27a   :  { %v221_v43 = vpop.permute.xlu0 %220 }
 0x27b   :  { %v227_v44 = vsel %vm222_vm2, %v221_v43, 0 }
 0x27c   :  { %3015 = vmatpush3.bf16.xpose.msra.mxu1 %v227_v44 }
 0x27d   :  { %3026 = vmatprep.subr.bf16.mxu1 %v3429_v14 }
 0x27e   :  { %v271_v45 = vpop.permute.xlu1 %270 }
 0x27f   :  { %v276_v46 = vsel %vm222_vm2, %v271_v45, 0 }
 0x280   :  { %3021 = vmatpush3.bf16.xpose.msra.mxu0 %v276_v46 }
 0x281   :  { %3032 = vmatprep.subr.bf16.mxu0 %v3429_v14 }
 0x283   :  { %3017 = vmatmul.mubr.msk.bf16.vlgmr.msra.gmra.mxu1 %vm222_vm2, %v3573_v38 }
 0x284   :  { %3028 = vmatprep.mubr.msk.bf16.mxu1 %vm3430_vm1, %v3429_v14 }
 0x287   :  { %3023 = vmatmul.mubr.msk.bf16.vlgmr.msra.gmra.mxu0 %vm222_vm2, %v3577_v42 }
 0x288   :  { %3034 = vmatprep.mubr.msk.bf16.mxu0 %vm3430_vm1, %v3429_v14 }
 0x343   :  { %v263_v59 = vpop.f32.mrf.mxu1 }
 0x344   :  { %v318_v60 = vmul.f32 0.35355338, %v263_v59 }
 0x345   :  { %v3018_v61 = vpop.f32.mrf.mxu1 }
 0x346   :  { %v330_v62 = vadd.f32 %v3596_v57, %v318_v60 }
 0x347   :  { %v266_v0 = vpop.f32.mrf.mxu1  ;;  %v312_v1 = vpop.f32.mrf.mxu0 }
 0x348   :  { %v319_v2 = vmul.f32 0.35355338, %v312_v1  ;;  %v332_v3 = vsel %vm222_vm2, %v330_v62, -inf }
 0x349   :  { %v3024_v4 = vpop.f32.mrf.mxu0  ;;  %333 = vmax.xlane.f32.xlu1 %v332_v3  ;;  %v3019_v5 = vpop.f32.mrf.mxu1 }
 0x34a   :  { %v331_v6 = vadd.f32 %v3599_v63, %v319_v2 }
 0x34b   :  { %v315_v7 = vpop.f32.mrf.mxu0 }
 0x34c   :  { %v335_v8 = vsel %vm222_vm2, %v331_v6, -inf }
 0x34d   :  { %336 = vmax.xlane.f32.xlu0 %v335_v8  ;;  %v3025_v9 = vpop.f32.mrf.mxu0 }
 0x35a   :  { %405 = vrot.lane.b32.xlu1 %v3577_v42, %s3433_s1 }
 0x35e   :  { %455 = vrot.lane.b32.xlu1 %v3573_v38, %s3434_s22 }
 0x3d2   :  { %v334_v10 = vpop.xlane.xlu1 %333 }
 0x3d3   :  { %v338_v11 = vsub.f32 %v330_v62, %v334_v10 }
 0x3d5   :  { %v340_v12 = vmul.f32 1.442695, %v338_v11 }
 0x3d6   :  { %v337_v13 = vpop.xlane.xlu0 %336  ;;  %v406_v15 = vpop.permute.xlu1 %405 }
 0x3d7   :  { %3341 = vpow2.f32 %v340_v12  ;;  %v339_v16 = vsub.f32 %v331_v6, %v337_v13  ;;  %v411_v17 = vsel %vm361_vm3, %v406_v15, 0 }
 0x3d8   :  { %3033 = vmatpush3.bf16.msra.mxu0 %v411_v17 }
 0x3d9   :  { %v342_v18 = vmul.f32 1.442695, %v339_v16  ;;  %3044 = vmatprep.subr.bf16.mxu0 %v3429_v14 }
 0x3da   :  { %v456_v23 = vpop.permute.xlu1 %455 }
 0x3db   :  { %3343 = vpow2.f32 %v342_v18  ;;  %v461_v34 = vsel %vm222_vm2, %v456_v23, 0 }
 0x3e4   :  { %v3342_v19 = vpop.eup %3341 }
 0x3e5   :  { %v344_v20 = vsel %vm222_vm2, %v3342_v19, 0.0 }
 0x3e6   :  { %345 = vadd.xlane.f32.xlu0 %v344_v20 }
 0x3e8   :  { %v3344_v21 = vpop.eup %3343 }
 0x3e9   :  { %v347_v22 = vsel %vm222_vm2, %v3344_v21, 0.0 }
 0x3ea   :  { %348 = vadd.xlane.f32.xlu1 %v347_v22 }
 0x3fb   :  { %505 = vrot.lane.b32.xlu1 %v3577_v42, %s3434_s22 }
 0x3fc   :  { %356 = vrot.lane.b32.xlu0 %v3573_v38, %s3433_s1 }
 0x3ff   :  { %503 = vrot.lane.b32.xlu1 %v3577_v42, %s3435_s23 }
 0x400   :  { %453 = vrot.lane.b32.xlu0 %v3573_v38, %s3435_s23 }
 0x46f   :  { %v346_v24 = vpop.xlane.xlu0 %345 }
 0x470   :  { %3345 = vrcp.f32 %v346_v24 }
 0x473   :  { %v357_v25 = vpop.permute.xlu0 %356  ;;  %v349_v26 = vpop.xlane.xlu1 %348 }
 0x474   :  { %v363_v27 = vsel %vm361_vm3, %v357_v25, 0  ;;  %3347 = vrcp.f32 %v349_v26 }
 0x475   :  { %3027 = vmatpush3.bf16.msra.mxu1 %v363_v27 }
 0x476   :  { %3038 = vmatprep.subr.bf16.mxu1 %v3429_v14 }
 0x477   :  { %v506_v36 = vpop.permute.xlu1 %505  ;;  %v454_v40 = vpop.permute.xlu0 %453 }
 0x478   :  { %v511_v39 = vsel %vm222_vm2, %v506_v36, 0 }
 0x47b   :  { %v504_v41 = vpop.permute.xlu1 %503 }
 0x47d   :  { %v3346_v28 = vpop.eup %3345 }
 0x47e   :  { %v352_v29 = vmul.f32 %v3346_v28, %v3342_v19 }
 0x480   :  { %v354_v30 = vpack.c.bf16 %v352_v29, %v352_v29 }
 0x481   :  { %v3348_v33 = vpop.eup %3347 }
 0x482   :  { %3029 = vmatmul.mubr.msk.bf16.vlgmr.msra.gmra.mxu1 %vm222_vm2, %v354_v30  ;;  %v353_v35 = vmul.f32 %v3348_v33, %v3344_v21 }
 0x483   :  { %3039 = vmatpush3.bf16.xpose.msra.mxu1 %v461_v34  ;;  %3040 = vmatprep.mubr.msk.bf16.mxu1 %vm3430_vm1, %v3429_v14 }
 0x484   :  { %v355_v37 = vpack.c.bf16 %v353_v35, %v353_v35  ;;  %3050 = vmatprep.subr.bf16.mxu1 %v3429_v14 }
 0x486   :  { %3035 = vmatmul.mubr.msk.bf16.vlgmr.msra.gmra.mxu0 %vm222_vm2, %v355_v37 }
 0x487   :  { %3045 = vmatpush3.bf16.xpose.msra.mxu0 %v511_v39  ;;  %3046 = vmatprep.mubr.msk.bf16.mxu0 %vm3430_vm1, %v3429_v14 }
 0x488   :  { %3056 = vmatprep.subr.bf16.mxu0 %v3429_v14 }
 0x48a   :  { %3041 = vmatmul.mubr.msk.bf16.vlgmr.msra.gmra.mxu1 %vm222_vm2, %v454_v40 }
 0x48b   :  { %3052 = vmatprep.mubr.msk.bf16.mxu1 %vm3430_vm1, %v3429_v14 }
 0x48e   :  { %3047 = vmatmul.mubr.msk.bf16.vlgmr.msra.gmra.mxu0 %vm222_vm2, %v504_v41 }
 0x48f   :  { %3058 = vmatprep.mubr.msk.bf16.mxu0 %vm3430_vm1, %v3429_v14 }
 0x542   :  { %v3638_v43 = vpop.f32.mrf.mxu1 }
 0x544   :  { %v3030_v44 = vpop.f32.mrf.mxu1 }
 0x546   :  { %v402_v45 = vpop.f32.mrf.mxu1  ;;  %v3640_v46 = vpop.f32.mrf.mxu0 }
 0x548   :  { %v3031_v47 = vpop.f32.mrf.mxu1  ;;  %v3036_v48 = vpop.f32.mrf.mxu0 }
 0x54a   :  { %v450_v49 = vpop.f32.mrf.mxu0  ;;  %v497_v50 = vpop.f32.mrf.mxu1 }
 0x54b   :  { %v553_v51 = vmul.f32 0.35355338, %v497_v50 }
 0x54c   :  { %v3037_v52 = vpop.f32.mrf.mxu0  ;;  %v3042_v53 = vpop.f32.mrf.mxu1 }
 0x54d   :  { %v555_v54 = vadd.f32 %v553_v51, %v3596_v57 }
 0x54e   :  { %v500_v55 = vpop.f32.mrf.mxu1  ;;  %v547_v56 = vpop.f32.mrf.mxu0 }
 0x54f   :  { %v554_v58 = vmul.f32 0.35355338, %v547_v56  ;;  %v557_v59 = vsel %vm222_vm2, %v555_v54, -inf }
 0x550   :  { %v3048_v60 = vpop.f32.mrf.mxu0  ;;  %558 = vmax.xlane.f32.xlu0 %v557_v59  ;;  %v3043_v61 = vpop.f32.mrf.mxu1 }
 0x551   :  { %v556_v62 = vadd.f32 %v554_v58, %v3599_v63 }
 0x552   :  { %v550_v0 = vpop.f32.mrf.mxu0 }
 0x553   :  { %v560_v1 = vsel %vm222_vm2, %v556_v62, -inf }
 0x554   :  { %561 = vmax.xlane.f32.xlu1 %v560_v1  ;;  %v3049_v2 = vpop.f32.mrf.mxu0 }
 0x565   :  { %629 = vrot.lane.b32.xlu1 %v3577_v42, %s3436_s24 }
 0x569   :  { %679 = vrot.lane.b32.xlu1 %v3573_v38, %s3437_s25 }
 0x56d   :  { %729 = vrot.lane.b32.xlu1 %v3577_v42, %s3437_s25 }
 0x571   :  { %727 = vrot.lane.b32.xlu1 %v3577_v42, %s3438_s26 }
 0x5d9   :  { %v559_v3 = vpop.xlane.xlu0 %558 }
 0x5da   :  { %v563_v4 = vsub.f32 %v555_v54, %v559_v3 }
 0x5dc   :  { %v565_v5 = vmul.f32 1.442695, %v563_v4 }
 0x5dd   :  { %v562_v6 = vpop.xlane.xlu1 %561 }
 0x5de   :  { %3349 = vpow2.f32 %v565_v5  ;;  %v564_v7 = vsub.f32 %v556_v62, %v562_v6 }
 0x5e0   :  { %v567_v8 = vmul.f32 1.442695, %v564_v7 }
 0x5e1   :  { %v630_v9 = vpop.permute.xlu1 %629 }
 0x5e2   :  { %3351 = vpow2.f32 %v567_v8  ;;  %v635_v10 = vsel %vm361_vm3, %v630_v9, 0 }
 0x5e3   :  { %3057 = vmatpush3.bf16.msra.mxu0 %v635_v10 }
 0x5e4   :  { %3068 = vmatprep.subr.bf16.mxu0 %v3429_v14 }
 0x5e5   :  { %v680_v21 = vpop.permute.xlu1 %679 }
 0x5e6   :  { %v685_v25 = vsel %vm222_vm2, %v680_v21, 0 }
 0x5e9   :  { %v730_v27 = vpop.permute.xlu1 %729 }
 0x5ea   :  { %v735_v29 = vsel %vm222_vm2, %v730_v27, 0 }
 0x5eb   :  { %v3350_v11 = vpop.eup %3349 }
 0x5ec   :  { %v569_v12 = vsel %vm222_vm2, %v3350_v11, 0.0 }
 0x5ed   :  { %570 = vadd.xlane.f32.xlu0 %v569_v12  ;;  %v728_v33 = vpop.permute.xlu1 %727 }
 0x5ef   :  { %v3352_v13 = vpop.eup %3351 }
 0x5f0   :  { %v572_v15 = vsel %vm222_vm2, %v3352_v13, 0.0 }
 0x5f1   :  { %573 = vadd.xlane.f32.xlu0 %v572_v15 }
 0x607   :  { %581 = vrot.lane.b32.xlu0 %v3573_v38, %s3436_s24 }
 0x60b   :  { %677 = vrot.lane.b32.xlu0 %v3573_v38, %s3438_s26 }
 0x676   :  { %v571_v16 = vpop.xlane.xlu0 %570 }
 0x677   :  { %3353 = vrcp.f32 %v571_v16 }
 0x67a   :  { %v574_v17 = vpop.xlane.xlu0 %573 }
 0x67b   :  { %3355 = vrcp.f32 %v574_v17 }
 0x67e   :  { %v582_v18 = vpop.permute.xlu0 %581 }
 0x67f   :  { %v587_v19 = vsel %vm361_vm3, %v582_v18, 0 }
 0x680   :  { %3051 = vmatpush3.bf16.msra.mxu1 %v587_v19 }
 0x681   :  { %3062 = vmatprep.subr.bf16.mxu1 %v3429_v14 }
 0x682   :  { %v678_v30 = vpop.permute.xlu0 %677 }
 0x684   :  { %v3354_v20 = vpop.eup %3353 }
 0x685   :  { %v577_v22 = vmul.f32 %v3354_v20, %v3350_v11 }
 0x687   :  { %v579_v23 = vpack.c.bf16 %v577_v22, %v577_v22 }
 0x688   :  { %v3356_v24 = vpop.eup %3355 }
 0x689   :  { %3053 = vmatmul.mubr.msk.bf16.vlgmr.msra.gmra.mxu1 %vm222_vm2, %v579_v23  ;;  %v578_v26 = vmul.f32 %v3356_v24, %v3352_v13 }
 0x68a   :  { %3063 = vmatpush3.bf16.xpose.msra.mxu1 %v685_v25  ;;  %3064 = vmatprep.mubr.msk.bf16.mxu1 %vm3430_vm1, %v3429_v14 }
 0x68b   :  { %v580_v28 = vpack.c.bf16 %v578_v26, %v578_v26  ;;  %3074 = vmatprep.subr.bf16.mxu1 %v3429_v14 }
 0x68d   :  { %3059 = vmatmul.mubr.msk.bf16.vlgmr.msra.gmra.mxu0 %vm222_vm2, %v580_v28 }
 0x68e   :  { %3069 = vmatpush3.bf16.xpose.msra.mxu0 %v735_v29  ;;  %3070 = vmatprep.mubr.msk.bf16.mxu0 %vm3430_vm1, %v3429_v14 }
 0x68f   :  { %3080 = vmatprep.subr.bf16.mxu0 %v3429_v14 }
 0x691   :  { %3065 = vmatmul.mubr.msk.bf16.vlgmr.msra.gmra.mxu1 %vm222_vm2, %v678_v30 }
 0x692   :  { %3076 = vmatprep.mubr.msk.bf16.mxu1 %vm3430_vm1, %v3429_v14 }
 0x695   :  { %3071 = vmatmul.mubr.msk.bf16.vlgmr.msra.gmra.mxu0 %vm222_vm2, %v728_v33 }
 0x696   :  { %3082 = vmatprep.mubr.msk.bf16.mxu0 %vm3430_vm1, %v3429_v14 }
 0x749   :  { %v3680_v34 = vpop.f32.mrf.mxu1 }
 0x74b   :  { %v3054_v35 = vpop.f32.mrf.mxu1 }
 0x74d   :  { %v626_v36 = vpop.f32.mrf.mxu1  ;;  %v3682_v37 = vpop.f32.mrf.mxu0 }
 0x74e   :  { %v3287_v39 = vpack.i.bf16 %v3682_v37, %v3680_v34 }
 0x74f   :  { %v3055_v40 = vpop.f32.mrf.mxu1  ;;  %v3060_v41 = vpop.f32.mrf.mxu0 }
 0x751   :  { %v674_v44 = vpop.f32.mrf.mxu0  ;;  %v721_v45 = vpop.f32.mrf.mxu1 }
 0x752   :  { %v777_v47 = vmul.f32 0.35355338, %v721_v45 }
 0x753   :  { %v3061_v48 = vpop.f32.mrf.mxu0  ;;  %v3066_v49 = vpop.f32.mrf.mxu1 }
 0x754   :  { %v779_v50 = vadd.f32 %v777_v47, %v3596_v57 }
 0x755   :  { %v724_v51 = vpop.f32.mrf.mxu1  ;;  %v771_v52 = vpop.f32.mrf.mxu0 }
 0x756   :  { %v778_v53 = vmul.f32 0.35355338, %v771_v52  ;;  %v781_v54 = vsel %vm222_vm2, %v779_v50, -inf }
 0x757   :  { %v3072_v55 = vpop.f32.mrf.mxu0  ;;  %782 = vmax.xlane.f32.xlu0 %v781_v54  ;;  %v3067_v56 = vpop.f32.mrf.mxu1 }
 0x758   :  { %v780_v58 = vadd.f32 %v778_v53, %v3599_v63 }
 0x759   :  { %v774_v59 = vpop.f32.mrf.mxu0 }
 0x75a   :  { %v784_v60 = vsel %vm222_vm2, %v780_v58, -inf }
 0x75b   :  { %785 = vmax.xlane.f32.xlu1 %v784_v60  ;;  %v3073_v61 = vpop.f32.mrf.mxu0 }
 0x76c   :  { %853 = vrot.lane.b32.xlu1 %v3577_v42, %s3439_s27 }
 0x770   :  { %903 = vrot.lane.b32.xlu1 %v3573_v38, %s3440_s28 }
 0x774   :  { %953 = vrot.lane.b32.xlu1 %v3577_v42, %s3440_s28 }
 0x778   :  { %951 = vrot.lane.b32.xlu1 %v3577_v42, %s3441_s29 }
 0x7e0   :  { %v783_v62 = vpop.xlane.xlu0 %782 }
 0x7e1   :  { %v787_v0 = vsub.f32 %v779_v50, %v783_v62 }
 0x7e3   :  { %v789_v1 = vmul.f32 1.442695, %v787_v0 }
 0x7e4   :  { %v786_v2 = vpop.xlane.xlu1 %785 }
 0x7e5   :  { %3357 = vpow2.f32 %v789_v1  ;;  %v788_v3 = vsub.f32 %v780_v58, %v786_v2 }
 0x7e7   :  { %v791_v4 = vmul.f32 1.442695, %v788_v3 }
 0x7e8   :  { %v854_v5 = vpop.permute.xlu1 %853 }
 0x7e9   :  { %3359 = vpow2.f32 %v791_v4  ;;  %v859_v6 = vsel %vm361_vm3, %v854_v5, 0 }
 0x7ea   :  { %3081 = vmatpush3.bf16.msra.mxu0 %v859_v6 }
 0x7eb   :  { %3092 = vmatprep.subr.bf16.mxu0 %v3429_v14 }
 0x7ec   :  { %v904_v17 = vpop.permute.xlu1 %903 }
 0x7ed   :  { %v909_v21 = vsel %vm222_vm2, %v904_v17, 0  ;;  %v3320_v17 = vld [vmem:[%s4108_s6] sm:$0xff]  }
 0x7f0   :  { %v954_v23 = vpop.permute.xlu1 %953 }
 0x7f1   :  { %v959_v25 = vsel %vm222_vm2, %v954_v23, 0 }
 0x7f2   :  { %v3358_v7 = vpop.eup %3357 }
 0x7f3   :  { %v793_v8 = vsel %vm222_vm2, %v3358_v7, 0.0 }
 0x7f4   :  { %794 = vadd.xlane.f32.xlu0 %v793_v8  ;;  %v952_v27 = vpop.permute.xlu1 %951 }
 0x7f6   :  { %v3360_v9 = vpop.eup %3359 }
 0x7f7   :  { %v796_v10 = vsel %vm222_vm2, %v3360_v9, 0.0 }
 0x7f8   :  { %797 = vadd.xlane.f32.xlu0 %v796_v10 }
 0x80e   :  { %805 = vrot.lane.b32.xlu0 %v3573_v38, %s3439_s27 }
 0x812   :  { %901 = vrot.lane.b32.xlu0 %v3573_v38, %s3441_s29 }
 0x87d   :  { %v795_v11 = vpop.xlane.xlu0 %794 }
 0x87e   :  { %3361 = vrcp.f32 %v795_v11 }
 0x881   :  { %v798_v12 = vpop.xlane.xlu0 %797 }
 0x882   :  { %3363 = vrcp.f32 %v798_v12 }
 0x885   :  { %v806_v13 = vpop.permute.xlu0 %805 }
 0x886   :  { %v811_v15 = vsel %vm361_vm3, %v806_v13, 0 }
 0x887   :  { %3075 = vmatpush3.bf16.msra.mxu1 %v811_v15 }
 0x888   :  { %3086 = vmatprep.subr.bf16.mxu1 %v3429_v14 }
 0x889   :  { %v902_v26 = vpop.permute.xlu0 %901 }
 0x88b   :  { %v3362_v16 = vpop.eup %3361 }
 0x88c   :  { %v801_v18 = vmul.f32 %v3362_v16, %v3358_v7  ;;  %v3319_v16 = vld [vmem:[%s4108_s6 + $0x8] sm:$0xff]  }
 0x88e   :  { %v803_v19 = vpack.c.bf16 %v801_v18, %v801_v18 }
 0x88f   :  { %v3364_v20 = vpop.eup %3363 }
 0x890   :  { %3077 = vmatmul.mubr.msk.bf16.vlgmr.msra.gmra.mxu1 %vm222_vm2, %v803_v19  ;;  %v802_v22 = vmul.f32 %v3364_v20, %v3360_v9 }
 0x891   :  { %3087 = vmatpush3.bf16.xpose.msra.mxu1 %v909_v21  ;;  %3088 = vmatprep.mubr.msk.bf16.mxu1 %vm3430_vm1, %v3429_v14 }
 0x892   :  { %v804_v24 = vpack.c.bf16 %v802_v22, %v802_v22  ;;  %3098 = vmatprep.subr.bf16.mxu1 %v3429_v14 }
 0x894   :  { %3083 = vmatmul.mubr.msk.bf16.vlgmr.msra.gmra.mxu0 %vm222_vm2, %v804_v24 }
 0x895   :  { %3093 = vmatpush3.bf16.xpose.msra.mxu0 %v959_v25  ;;  %3094 = vmatprep.mubr.msk.bf16.mxu0 %vm3430_vm1, %v3429_v14 }
 0x896   :  { %3104 = vmatprep.subr.bf16.mxu0 %v3429_v14 }
 0x898   :  { %3089 = vmatmul.mubr.msk.bf16.vlgmr.msra.gmra.mxu1 %vm222_vm2, %v902_v26 }
 0x899   :  { %3100 = vmatprep.mubr.msk.bf16.mxu1 %vm3430_vm1, %v3429_v14 }
 0x89c   :  { %3095 = vmatmul.mubr.msk.bf16.vlgmr.msra.gmra.mxu0 %vm222_vm2, %v952_v27 }
 0x89d   :  { %3106 = vmatprep.mubr.msk.bf16.mxu0 %vm3430_vm1, %v3429_v14 }
 0x950   :  { %v847_v28 = vpop.f32.mrf.mxu1 }
 0x952   :  { %v3078_v29 = vpop.f32.mrf.mxu1 }
 0x954   :  { %v850_v30 = vpop.f32.mrf.mxu1  ;;  %v895_v33 = vpop.f32.mrf.mxu0 }
 0x955   :  { %v3292_v60 = vpack.i.bf16 %v895_v33, %v847_v28 }
 0x956   :  { %v3079_v35 = vpop.f32.mrf.mxu1  ;;  %v3084_v36 = vpop.f32.mrf.mxu0 }
 0x958   :  { %v898_v40 = vpop.f32.mrf.mxu0  ;;  %v945_v41 = vpop.f32.mrf.mxu1 }
 0x959   :  { %v1001_v44 = vmul.f32 0.35355338, %v945_v41 }
 0x95a   :  { %v3085_v45 = vpop.f32.mrf.mxu0  ;;  %v3090_v47 = vpop.f32.mrf.mxu1 }
 0x95b   :  { %v1003_v48 = vadd.f32 %v1001_v44, %v3596_v57 }
 0x95c   :  { %v948_v49 = vpop.f32.mrf.mxu1  ;;  %v995_v50 = vpop.f32.mrf.mxu0 }
 0x95d   :  { %v1002_v51 = vmul.f32 0.35355338, %v995_v50  ;;  %v1005_v52 = vsel %vm222_vm2, %v1003_v48, -inf }
 0x95e   :  { %v3096_v53 = vpop.f32.mrf.mxu0  ;;  %1006 = vmax.xlane.f32.xlu0 %v1005_v52  ;;  %v3091_v54 = vpop.f32.mrf.mxu1 }
 0x95f   :  { %v1004_v55 = vadd.f32 %v1002_v51, %v3599_v63 }
 0x960   :  { %v998_v56 = vpop.f32.mrf.mxu0 }
 0x961   :  { %v1008_v58 = vsel %vm222_vm2, %v1004_v55, -inf }
 0x962   :  { %1009 = vmax.xlane.f32.xlu1 %v1008_v58  ;;  %v3097_v59 = vpop.f32.mrf.mxu0 }
 0x973   :  { %1077 = vrot.lane.b32.xlu1 %v3577_v42, %s4123_s30 }
 0x977   :  { %3288 = vrot.lane.b32.xlu1 %v3287_v39, %s4122_s0 }
 0x97b   :  { %3293 = vrot.lane.b32.xlu1 %v3292_v60, %s4121_s17 }
 0x9e7   :  { %v1007_v61 = vpop.xlane.xlu0 %1006 }
 0x9e8   :  { %v1011_v62 = vsub.f32 %v1003_v48, %v1007_v61 }
 0x9ea   :  { %v1013_v0 = vmul.f32 1.442695, %v1011_v62 }
 0x9eb   :  { %v1010_v1 = vpop.xlane.xlu1 %1009 }
 0x9ec   :  { %3365 = vpow2.f32 %v1013_v0  ;;  %v1012_v2 = vsub.f32 %v1004_v55, %v1010_v1 }
 0x9ee   :  { %v1015_v3 = vmul.f32 1.442695, %v1012_v2 }
 0x9ef   :  { %v1078_v4 = vpop.permute.xlu1 %1077 }
 0x9f0   :  { %3367 = vpow2.f32 %v1015_v3  ;;  %v1083_v42 = vsel %vm361_vm3, %v1078_v4, 0 }
 0x9f1   :  { %3105 = vmatpush3.bf16.msra.mxu0 %v1083_v42 }
 0x9f2   :  { %3118 = vmatprep.subr.bf16.mxu0 %v3429_v14 }
 0x9f3   :  { %v3289_v27 = vpop.permute.xlu1 %3288 }
 0x9f4   :  { %v3291_v29 = vunpack.i.h.bf16 %v3289_v27  ;;  %v3290_v30 = vunpack.i.l.bf16 %v3289_v27 }
 0x9f6   :  { %v1150_v40 = vsel %vm222_vm2, %v3640_v46, %v3291_v29  ;;  %v1149_v41 = vsel %vm222_vm2, %v3638_v43, %v3290_v30  ;;  %v2830_v43 = vld [vmem:[%s4109_s7] ss:$0 sm:$0xff] }
 0x9f7   :  { %v3294_v28 = vpop.permute.xlu1 %3293 }
 0x9f8   :  { %v3296_v33 = vunpack.i.h.bf16 %v3294_v28  ;;  %v3295_v35 = vunpack.i.l.bf16 %v3294_v28 }
 0x9f9   :  { %v3366_v34 = vpop.eup %3365 }
 0x9fa   :  { %v1017_v37 = vsel %vm222_vm2, %v3366_v34, 0.0  ;;  %v1153_v47 = vsel %vm1151_vm4, %v1150_v40, %v3296_v33  ;;  %v1152_v48 = vsel %vm1151_vm4, %v1149_v41, %v3295_v35 }
 0x9fb   :  { %1018 = vadd.xlane.f32.xlu0 %v1017_v37 }
 0x9fd   :  { %v3368_v39 = vpop.eup %3367 }
 0x9fe   :  { %v1020_v5 = vsel %vm222_vm2, %v3368_v39, 0.0 }
 0x9ff   :  { %1021 = vadd.xlane.f32.xlu0 %v1020_v5 }
 0xa15   :  { %1029 = vrot.lane.b32.xlu0 %v3573_v38, %s4123_s30 }
 0xa84   :  { %v1019_v6 = vpop.xlane.xlu0 %1018 }
 0xa85   :  { %3369 = vrcp.f32 %v1019_v6 }
 0xa88   :  { %v1022_v7 = vpop.xlane.xlu0 %1021 }
 0xa89   :  { %3371 = vrcp.f32 %v1022_v7 }
 0xa8c   :  { %v1030_v8 = vpop.permute.xlu0 %1029 }
 0xa8d   :  { %v1035_v9 = vsel %vm361_vm3, %v1030_v8, 0 }
 0xa8e   :  { %3099 = vmatpush3.bf16.msra.mxu1 %v1035_v9 }
 0xa8f   :  { %3110 = vmatprep.subr.bf16.mxu1 %v3429_v14 }
 0xa92   :  { %v3370_v10 = vpop.eup %3369 }
 0xa93   :  { %v1025_v11 = vmul.f32 %v3370_v10, %v3366_v34 }
 0xa95   :  { %v1027_v12 = vpack.c.bf16 %v1025_v11, %v1025_v11 }
 0xa96   :  { %v3372_v13 = vpop.eup %3371 }
 0xa97   :  { %3101 = vmatmul.mubr.msk.bf16.vlgmr.msra.gmra.mxu1 %vm222_vm2, %v1027_v12  ;;  %v1026_v15 = vmul.f32 %v3372_v13, %v3368_v39  ;;  %v3322_v39 = vld [vmem:[%s4110_s10] sm:$0xff]  }
 0xa98   :  { %3114 = vmatprep.mubr.msk.bf16.mxu1 %vm3430_vm1, %v3429_v14  ;;  %3111 = vmatpush3.bf16.msra.mxu1 %v3319_v16  ;;  %v2834_v13 = vld [vmem:[%s4111_s8] ss:$0 sm:$0xff] }
 0xa99   :  { %v1028_v38 = vpack.c.bf16 %v1026_v15, %v1026_v15  ;;  %3112 = vmatprep.subr.bf16.mxu1 %v3429_v14 }
 0xa9b   :  { %3107 = vmatmul.mubr.msk.bf16.vlgmr.msra.gmra.mxu0 %vm222_vm2, %v1028_v38 }
 0xa9c   :  { %3122 = vmatprep.mubr.msk.bf16.mxu0 %vm3430_vm1, %v3429_v14  ;;  %3113 = vmatpush3.bf16.msra.mxu1 %v3320_v17  ;;  %v2835_v17 = vld [vmem:[%s4112_s9] ss:$0 sm:$0xff] }
 0xa9d   :  { %3126 = vmatprep.subr.bf16.mxu1 %v3429_v14 }
 0xb57   :  { %v1071_v18 = vpop.f32.mrf.mxu1 }
 0xb59   :  { %v3102_v19 = vpop.f32.mrf.mxu1 }
 0xb5b   :  { %v1074_v20 = vpop.f32.mrf.mxu1  ;;  %v1119_v21 = vpop.f32.mrf.mxu0 }
 0xb5c   :  { %v3297_v22 = vpack.i.bf16 %v1119_v21, %v1071_v18 }
 0xb5d   :  { %v3103_v23 = vpop.f32.mrf.mxu1  ;;  %v3108_v24 = vpop.f32.mrf.mxu0 }
 0xb5e   :  { %3298 = vrot.lane.b32.xlu0 %v3297_v22, %s4120_s21  ;;  %v3323_v22 = vld [vmem:[%s4113_s12 + $0x18] sm:$0xff]   ;;  %v3324_v23 = vld [vmem:[%s4113_s12 + $0x10] sm:$0xff]   ;;  %v3325_v24 = vld [vmem:[%s4113_s12 + $0x8] sm:$0xff]  }
 0xb5f   :  { %v1122_v25 = vpop.f32.mrf.mxu0 }
 0xb60   :  { %v3326_v25 = vld [vmem:[%s4113_s12] sm:$0xff]  }
 0xb61   :  { %v3109_v26 = vpop.f32.mrf.mxu0 }
 0xb62   :  { %v2836_v26 = vld [vmem:[%s4114_s11] ss:$0 sm:$0xff] }
 0xbd0   :  { %v3299_v36 = vpop.permute.xlu0 %3298 }
 0xbd1   :  { %v3301_v44 = vunpack.i.h.bf16 %v3299_v36  ;;  %v3300_v45 = vunpack.i.l.bf16 %v3299_v36 }
 0xbd3   :  { %v1156_v49 = vsel %vm1154_vm5, %v1153_v47, %v3301_v44  ;;  %v1155_v50 = vsel %vm1154_vm5, %v1152_v48, %v3300_v45 }
 0xbd4   :  { %v1157_v51 = vpack.c.bf16 %v1156_v49, %v1155_v50 }
 0xbd6   :  { %3115 = vmatmul.mubr.msk.bf16.vlgmr.msra.gmra.mxu1 %vm58_vm0, %v1157_v51 }
 0xbd7   :  { %3134 = vmatprep.mubr.msk.bf16.mxu1 %vm3430_vm1, %v3429_v14  ;;  %3127 = vmatpush3.bf16.msra.mxu1 %v3323_v22  ;;  %v2846_v22 = vld [vmem:[%s4116_s14] ss:$0 sm:$0xff] }
 0xbd8   :  { %3128 = vmatprep.subr.bf16.mxu1 %v3429_v14 }
 0xbdb   :  { %3129 = vmatpush3.bf16.msra.mxu1 %v3324_v23 }
 0xbdc   :  { %3130 = vmatprep.subr.bf16.mxu1 %v3429_v14 }
 0xbdf   :  { %3131 = vmatpush3.bf16.msra.mxu1 %v3325_v24 }
 0xbe0   :  { %3132 = vmatprep.subr.bf16.mxu1 %v3429_v14 }
 0xbe3   :  { %3133 = vmatpush3.bf16.msra.mxu1 %v3326_v25 }
 0xbe4   :  { %3152 = vmatprep.subr.bf16.mxu1 %v3429_v14 }
 0xc96   :  { %v1213_v46 = vpop.f32.mrf.mxu1 }
 0xc97   :  { %v1214_v52 = vadd.f32 %v2830_v43, %v1213_v46 }
 0xc98   :  { %v3116_v53 = vpop.f32.mrf.mxu1 }
 0xc99   :  { %v1220_v54 = vadd.f32 %v1214_v52, %v3561_v31 }
 0xc9a   :  { %v1216_v55 = vpop.f32.mrf.mxu1 }
 0xc9b   :  { %v1217_v56 = vadd.f32 %v2830_v43, %v1216_v55  ;;  %v1222_v58 = vsel %vm58_vm0, %v1220_v54, 0.0 }
 0xc9c   :  { %1223 = vadd.xlane.f32.xlu1 %v1222_v58  ;;  %v3117_v59 = vpop.f32.mrf.mxu1 }
 0xc9d   :  { %v1221_v60 = vadd.f32 %v1217_v56, %v3563_v32  ;;  %v3321_v32 = vld [vmem:[%s4110_s10 + $0x8] sm:$0xff]  }
 0xc9e   :  { %3119 = vmatpush3.bf16.msra.mxu0 %v3321_v32 }
 0xc9f   :  { %v1225_v61 = vsel %vm58_vm0, %v1221_v60, 0.0  ;;  %3120 = vmatprep.subr.bf16.mxu0 %v3429_v14 }
 0xca0   :  { %1226 = vadd.xlane.f32.xlu0 %v1225_v61 }
 0xca2   :  { %3121 = vmatpush3.bf16.msra.mxu0 %v3322_v39 }
 0xca3   :  { %3138 = vmatprep.subr.bf16.mxu0 %v3429_v14 }
 0xd25   :  { %v1224_v62 = vpop.xlane.xlu1 %1223 }
 0xd26   :  { %v1228_v0 = vmul.f32 0.03125, %v1224_v62 }
 0xd28   :  { %v1230_v1 = vsub.f32 %v1220_v54, %v1228_v0 }
 0xd29   :  { %v1227_v2 = vpop.xlane.xlu0 %1226 }
 0xd2a   :  { %v1229_v3 = vmul.f32 0.03125, %v1227_v2  ;;  %v1232_v4 = vmul.f32 %v1230_v1, %v1230_v1 }
 0xd2c   :  { %v1231_v42 = vsub.f32 %v1221_v60, %v1229_v3  ;;  %v1234_v31 = vsel %vm58_vm0, %v1232_v4, 0.0  ;;  %v2840_v60 = vld [vmem:[%s4115_s13] ss:$0 sm:$0xff] }
 0xd2d   :  { %1235 = vadd.xlane.f32.xlu0 %v1234_v31 }
 0xd2e   :  { %v1233_v34 = vmul.f32 %v1231_v42, %v1231_v42 }
 0xd30   :  { %v1237_v37 = vsel %vm58_vm0, %v1233_v34, 0.0 }
 0xd31   :  { %1238 = vadd.xlane.f32.xlu0 %v1237_v37 }
 0xdb6   :  { %v1236_v5 = vpop.xlane.xlu0 %1235 }
 0xdb7   :  { %v1240_v6 = vmul.f32 0.03125, %v1236_v5 }
 0xdb9   :  { %v1242_v7 = vadd.f32 1e-12, %v1240_v6 }
 0xdba   :  { %v1239_v8 = vpop.xlane.xlu0 %1238 }
 0xdbb   :  { %3373 = vrsqrt.f32 %v1242_v7  ;;  %v1241_v9 = vmul.f32 0.03125, %v1239_v8 }
 0xdbd   :  { %v1243_v10 = vadd.f32 1e-12, %v1241_v9 }
 0xdbf   :  { %3375 = vrsqrt.f32 %v1243_v10 }
 0xdc8   :  { %v3374_v11 = vpop.eup %3373 }
 0xdc9   :  { %v1246_v12 = vmul.f32 %v3374_v11, %v1230_v1 }
 0xdcb   :  { %v1254_v16 = vmul.f32 %v2834_v13, %v1246_v12  ;;  %v3327_v12 = vld [vmem:[%s4103_s4 + $0x18] sm:$0xff]  }
 0xdcc   :  { %v3376_v15 = vpop.eup %3375 }
 0xdcd   :  { %v1247_v38 = vmul.f32 %v3376_v15, %v1231_v42  ;;  %v1262_v19 = vadd.f32 %v2835_v17, %v1254_v16 }
 0xdcf   :  { %v1255_v18 = vmul.f32 %v2834_v13, %v1247_v38  ;;  %v3328_v13 = vld [vmem:[%s4103_s4 + $0x10] sm:$0xff]  }
 0xdd1   :  { %v1263_v20 = vadd.f32 %v2835_v17, %v1255_v18 }
 0xdd3   :  { %v1264_v21 = vpack.c.bf16 %v1263_v20, %v1262_v19 }
 0xdd5   :  { %3123 = vmatmul.mubr.msk.bf16.vlgmr.msra.gmra.mxu0 %vm58_vm0, %v1264_v21 }
 0xdd6   :  { %3142 = vmatprep.mubr.msk.bf16.mxu0 %vm3430_vm1, %v3429_v14  ;;  %3139 = vmatpush3.bf16.msra.mxu0 %v3327_v12 }
 0xdd7   :  { %3140 = vmatprep.subr.bf16.mxu0 %v3429_v14 }
 0xdda   :  { %3141 = vmatpush3.bf16.msra.mxu0 %v3328_v13 }
 0xddb   :  { %3146 = vmatprep.subr.bf16.mxu0 %v3429_v14 }
 0xe95   :  { %v1320_v27 = vpop.f32.mrf.mxu0 }
 0xe96   :  { %v1321_v28 = vadd.f32 %v2836_v26, %v1320_v27 }
 0xe97   :  { %v3124_v29 = vpop.f32.mrf.mxu0 }
 0xe98   :  { %v1329_v30 = vmul.f32 0.044715, %v1321_v28  ;;  %v1327_v53 = vmul.f32 0.5, %v1321_v28 }
 0xe99   :  { %v1323_v33 = vpop.f32.mrf.mxu0 }
 0xe9a   :  { %v1331_v35 = vmul.f32 %v1329_v30, %v1321_v28  ;;  %v1324_v36 = vadd.f32 %v2836_v26, %v1323_v33  ;;  %v2847_v26 = vld [vmem:[%s4117_s15] ss:$0 sm:$0xff]  ;;  %v2876_v33 = vld [vmem:[%s4106_s5 + $0x1] ss:$0 sm:$0xff]  ;;  %s4127_s5 = smov 40  }
 0xe9b   :  { %v3125_v40 = vpop.f32.mrf.mxu0 }
 0xe9c   :  { %v1333_v41 = vmul.f32 %v1331_v35, %v1321_v28  ;;  %v1330_v44 = vmul.f32 0.044715, %v1324_v36  ;;  %v1328_v54 = vmul.f32 0.5, %v1324_v36 }
 0xe9e   :  { %v1335_v45 = vadd.f32 %v1333_v41, %v1321_v28  ;;  %v1332_v47 = vmul.f32 %v1330_v44, %v1324_v36 }
 0xea0   :  { %v1337_v48 = vmul.f32 0.7978846, %v1335_v45  ;;  %v1334_v49 = vmul.f32 %v1332_v47, %v1324_v36 }
 0xea2   :  { %3377 = vtanh.f32 %v1337_v48  ;;  %v1336_v50 = vadd.f32 %v1334_v49, %v1324_v36 }
 0xea4   :  { %v1338_v51 = vmul.f32 0.7978846, %v1336_v50 }
 0xea6   :  { %3379 = vtanh.f32 %v1338_v51 }
 0xeaf   :  { %v3378_v43 = vpop.eup %3377 }
 0xeb0   :  { %v1341_v46 = vadd.f32 1.0, %v3378_v43 }
 0xeb2   :  { %v1343_v56 = vmul.f32 %v1341_v46, %v1327_v53 }
 0xeb3   :  { %v3380_v52 = vpop.eup %3379 }
 0xeb4   :  { %v1342_v55 = vadd.f32 1.0, %v3380_v52 }
 0xeb6   :  { %v1344_v58 = vmul.f32 %v1342_v55, %v1328_v54 }
 0xeb8   :  { %v1345_v59 = vpack.c.bf16 %v1344_v58, %v1343_v56 }
 0xeba   :  { %3135 = vmatmul.mubr.msk.bf16.vlgmr.msra.gmra.mxu1 %vm1376_vm6, %v1345_v59 }
 0xebb   :  { %3154 = vmatprep.mubr.msk.bf16.mxu1 %vm3430_vm1, %v3429_v14 }
 0xf7a   :  { %v1414_v61 = vpop.f32.mrf.mxu1 }
 0xf7b   :  { %v1415_v62 = vadd.f32 %v2840_v60, %v1414_v61 }
 0xf7c   :  { %v3136_v0 = vpop.f32.mrf.mxu1 }
 0xf7d   :  { %v1421_v1 = vadd.f32 %v1415_v62, %v1262_v19 }
 0xf7e   :  { %v1417_v2 = vpop.f32.mrf.mxu1 }
 0xf7f   :  { %v1418_v3 = vadd.f32 %v2840_v60, %v1417_v2  ;;  %v1423_v4 = vsel %vm58_vm0, %v1421_v1, 0.0 }
 0xf80   :  { %1424 = vadd.xlane.f32.xlu1 %v1423_v4  ;;  %v3137_v42 = vpop.f32.mrf.mxu1 }
 0xf81   :  { %v1422_v31 = vadd.f32 %v1418_v3, %v1263_v20 }
 0xf83   :  { %v1426_v34 = vsel %vm58_vm0, %v1422_v31, 0.0 }
 0xf84   :  { %1427 = vadd.xlane.f32.xlu0 %v1426_v34 }
0x1009   :  { %v1425_v37 = vpop.xlane.xlu1 %1424 }
0x100a   :  { %v1429_v32 = vmul.f32 0.03125, %v1425_v37 }
0x100c   :  { %v1431_v39 = vsub.f32 %v1421_v1, %v1429_v32 }
0x100d   :  { %v1428_v5 = vpop.xlane.xlu0 %1427 }
0x100e   :  { %v1430_v6 = vmul.f32 0.03125, %v1428_v5  ;;  %v1433_v7 = vmul.f32 %v1431_v39, %v1431_v39 }
0x1010   :  { %v1432_v8 = vsub.f32 %v1422_v31, %v1430_v6  ;;  %v1435_v9 = vsel %vm58_vm0, %v1433_v7, 0.0 }
0x1011   :  { %1436 = vadd.xlane.f32.xlu1 %v1435_v9 }
0x1012   :  { %v1434_v10 = vmul.f32 %v1432_v8, %v1432_v8 }
0x1014   :  { %v1438_v11 = vsel %vm58_vm0, %v1434_v10, 0.0 }
0x1015   :  { %1439 = vadd.xlane.f32.xlu0 %v1438_v11 }
0x109a   :  { %v1437_v15 = vpop.xlane.xlu1 %1436 }
0x109b   :  { %v1441_v38 = vmul.f32 0.03125, %v1437_v15 }
0x109d   :  { %v1443_v16 = vadd.f32 1e-12, %v1441_v38 }
0x109e   :  { %v1440_v17 = vpop.xlane.xlu0 %1439 }
0x109f   :  { %3381 = vrsqrt.f32 %v1443_v16  ;;  %v1442_v18 = vmul.f32 0.03125, %v1440_v17 }
0x10a1   :  { %v1444_v19 = vadd.f32 1e-12, %v1442_v18 }
0x10a3   :  { %3383 = vrsqrt.f32 %v1444_v19 }
0x10ac   :  { %v3382_v20 = vpop.eup %3381 }
0x10ad   :  { %v1447_v21 = vmul.f32 %v3382_v20, %v1431_v39 }
0x10af   :  { %v1455_v25 = vmul.f32 %v2846_v22, %v1447_v21 }
0x10b0   :  { %v3384_v23 = vpop.eup %3383 }
0x10b1   :  { %v1448_v24 = vmul.f32 %v3384_v23, %v1432_v8  ;;  %v3838_v28 = vadd.f32 %v2847_v26, %v1455_v25 }
0x10b3   :  { %v1456_v27 = vmul.f32 %v2846_v22, %v1448_v24 }
0x10b5   :  { %v3840_v29 = vadd.f32 %v2847_v26, %v1456_v27 }
0x10b7   :  { %v1505_v30 = vpack.c.bf16 %v3840_v29, %v3838_v28 }
0x10b9   :  { %3143 = vmatmul.mubr.msk.bf16.vlgmr.msra.gmra.mxu0 %vm58_vm0, %v1505_v30 }
0x10ba   :  { %3148 = vmatprep.mubr.msk.bf16.mxu0 %vm3430_vm1, %v3429_v14 }
0x1179   :  { %v1561_v35 = vpop.f32.mrf.mxu0 }
0x117a   :  { %v1562_v36 = vadd.f32 %v2876_v33, %v1561_v35 }
0x117b   :  { %v3144_v40 = vpop.f32.mrf.mxu0 }
0x117c   :  { %v3850_v41 = vpack.c.bf16 %v1562_v36, %v1562_v36 }
0x117d   :  { %v1564_v44 = vpop.f32.mrf.mxu0 }
0x117e   :  { %v1565_v45 = vadd.f32 %v2876_v33, %v1564_v44  ;;  %1571 = vrot.lane.b32.xlu1 %v3850_v41, %s3431_s3 }
0x117f   :  { %v3145_v47 = vpop.f32.mrf.mxu0 }
0x1180   :  { %v3854_v48 = vpack.c.bf16 %v1565_v45, %v1565_v45 }
0x1182   :  { %1620 = vrot.lane.b32.xlu0 %v3854_v48, %s3431_s3  ;;  %s4128_s3 = smov 8  }
0x11f0   :  { %v1572_v49 = vpop.permute.xlu1 %1571 }
0x11f1   :  { %v1577_v50 = vsel %vm222_vm2, %v1572_v49, 0 }
0x11f2   :  { %3147 = vmatpush3.bf16.xpose.msra.mxu0 %v1577_v50 }
0x11f3   :  { %3158 = vmatprep.subr.bf16.mxu0 %v3429_v14 }
0x11f4   :  { %v1621_v51 = vpop.permute.xlu0 %1620 }
0x11f5   :  { %v1626_v43 = vsel %vm222_vm2, %v1621_v51, 0 }
0x11f6   :  { %3153 = vmatpush3.bf16.xpose.msra.mxu1 %v1626_v43 }
0x11f7   :  { %3164 = vmatprep.subr.bf16.mxu1 %v3429_v14 }
0x11f9   :  { %3149 = vmatmul.mubr.msk.bf16.vlgmr.msra.gmra.mxu0 %vm222_vm2, %v3850_v41 }
0x11fa   :  { %3160 = vmatprep.mubr.msk.bf16.mxu0 %vm3430_vm1, %v3429_v14 }
0x11fd   :  { %3155 = vmatmul.mubr.msk.bf16.vlgmr.msra.gmra.mxu1 %vm222_vm2, %v3854_v48 }
0x11fe   :  { %3166 = vmatprep.mubr.msk.bf16.mxu1 %vm3430_vm1, %v3429_v14 }
0x12b9   :  { %v1613_v46 = vpop.f32.mrf.mxu0 }
0x12ba   :  { %v1668_v52 = vmul.f32 0.35355338, %v1613_v46 }
0x12bb   :  { %v3150_v53 = vpop.f32.mrf.mxu0 }
0x12bc   :  { %v1670_v54 = vadd.f32 %v1668_v52, %v3596_v57 }
0x12bd   :  { %v1616_v55 = vpop.f32.mrf.mxu0  ;;  %v1662_v56 = vpop.f32.mrf.mxu1 }
0x12be   :  { %v1669_v58 = vmul.f32 0.35355338, %v1662_v56  ;;  %v1672_v59 = vsel %vm222_vm2, %v1670_v54, -inf }
0x12bf   :  { %1673 = vmax.xlane.f32.xlu1 %v1672_v59  ;;  %v3151_v60 = vpop.f32.mrf.mxu0  ;;  %v3156_v61 = vpop.f32.mrf.mxu1 }
0x12c0   :  { %v1671_v62 = vadd.f32 %v1669_v58, %v3599_v63 }
0x12c1   :  { %v1665_v0 = vpop.f32.mrf.mxu1 }
0x12c2   :  { %v1675_v1 = vsel %vm222_vm2, %v1671_v62, -inf }
0x12c3   :  { %1676 = vmax.xlane.f32.xlu0 %v1675_v1  ;;  %v3157_v2 = vpop.f32.mrf.mxu1 }
0x12d0   :  { %1696 = vrot.lane.b32.xlu1 %v3850_v41, %s3433_s1 }
0x1348   :  { %v1674_v3 = vpop.xlane.xlu1 %1673 }
0x1349   :  { %v1678_v4 = vsub.f32 %v1670_v54, %v1674_v3 }
0x134b   :  { %v1680_v42 = vmul.f32 1.442695, %v1678_v4 }
0x134c   :  { %v1697_v31 = vpop.permute.xlu1 %1696  ;;  %v1677_v34 = vpop.xlane.xlu0 %1676 }
0x134d   :  { %3385 = vpow2.f32 %v1680_v42  ;;  %v1702_v37 = vsel %vm361_vm3, %v1697_v31, 0  ;;  %v1679_v32 = vsub.f32 %v1671_v62, %v1677_v34 }
0x134e   :  { %3159 = vmatpush3.bf16.msra.mxu0 %v1702_v37 }
0x134f   :  { %v1682_v39 = vmul.f32 1.442695, %v1679_v32  ;;  %3170 = vmatprep.subr.bf16.mxu0 %v3429_v14 }
0x1351   :  { %3387 = vpow2.f32 %v1682_v39 }
0x135a   :  { %v3386_v5 = vpop.eup %3385 }
0x135b   :  { %v1684_v6 = vsel %vm222_vm2, %v3386_v5, 0.0 }
0x135c   :  { %1685 = vadd.xlane.f32.xlu1 %v1684_v6 }
0x135e   :  { %v3388_v7 = vpop.eup %3387 }
0x135f   :  { %v1687_v8 = vsel %vm222_vm2, %v3388_v7, 0.0 }
0x1360   :  { %1688 = vadd.xlane.f32.xlu0 %v1687_v8 }
0x136d   :  { %1794 = vrot.lane.b32.xlu1 %v3850_v41, %s3434_s22 }
0x1371   :  { %1844 = vrot.lane.b32.xlu1 %v3854_v48, %s3434_s22 }
0x1375   :  { %1792 = vrot.lane.b32.xlu1 %v3850_v41, %s3435_s23 }
0x1376   :  { %1744 = vrot.lane.b32.xlu0 %v3854_v48, %s3433_s1  ;;  %s4129_s1 = smov 16  }
0x137a   :  { %1842 = vrot.lane.b32.xlu0 %v3854_v48, %s3435_s23 }
0x13e5   :  { %v1686_v9 = vpop.xlane.xlu1 %1685 }
0x13e6   :  { %3389 = vrcp.f32 %v1686_v9 }
0x13e9   :  { %v1689_v10 = vpop.xlane.xlu0 %1688  ;;  %v1795_v15 = vpop.permute.xlu1 %1794 }
0x13ea   :  { %3391 = vrcp.f32 %v1689_v10  ;;  %v1800_v18 = vsel %vm222_vm2, %v1795_v15, 0 }
0x13ed   :  { %v1745_v11 = vpop.permute.xlu0 %1744  ;;  %v1845_v20 = vpop.permute.xlu1 %1844 }
0x13ee   :  { %v1750_v12 = vsel %vm361_vm3, %v1745_v11, 0  ;;  %v1850_v22 = vsel %vm222_vm2, %v1845_v20, 0 }
0x13ef   :  { %3165 = vmatpush3.bf16.msra.mxu1 %v1750_v12 }
0x13f0   :  { %3176 = vmatprep.subr.bf16.mxu1 %v3429_v14 }
0x13f1   :  { %v1793_v23 = vpop.permute.xlu1 %1792  ;;  %v1843_v24 = vpop.permute.xlu0 %1842 }
0x13f3   :  { %v3390_v13 = vpop.eup %3389 }
0x13f4   :  { %v1692_v38 = vmul.f32 %v3390_v13, %v3386_v5 }
0x13f6   :  { %v1694_v16 = vpack.c.bf16 %v1692_v38, %v1692_v38 }
0x13f7   :  { %v3392_v17 = vpop.eup %3391 }
0x13f8   :  { %3161 = vmatmul.mubr.msk.bf16.vlgmr.msra.gmra.mxu0 %vm222_vm2, %v1694_v16  ;;  %v1693_v19 = vmul.f32 %v3392_v17, %v3388_v7 }
0x13f9   :  { %3171 = vmatpush3.bf16.xpose.msra.mxu0 %v1800_v18  ;;  %3172 = vmatprep.mubr.msk.bf16.mxu0 %vm3430_vm1, %v3429_v14 }
0x13fa   :  { %v1695_v21 = vpack.c.bf16 %v1693_v19, %v1693_v19  ;;  %3182 = vmatprep.subr.bf16.mxu0 %v3429_v14 }
0x13fc   :  { %3167 = vmatmul.mubr.msk.bf16.vlgmr.msra.gmra.mxu1 %vm222_vm2, %v1695_v21 }
0x13fd   :  { %3177 = vmatpush3.bf16.xpose.msra.mxu1 %v1850_v22  ;;  %3178 = vmatprep.mubr.msk.bf16.mxu1 %vm3430_vm1, %v3429_v14 }
0x13fe   :  { %3188 = vmatprep.subr.bf16.mxu1 %v3429_v14 }
0x1400   :  { %3173 = vmatmul.mubr.msk.bf16.vlgmr.msra.gmra.mxu0 %vm222_vm2, %v1793_v23 }
0x1401   :  { %3184 = vmatprep.mubr.msk.bf16.mxu0 %vm3430_vm1, %v3429_v14 }
0x1404   :  { %3179 = vmatmul.mubr.msk.bf16.vlgmr.msra.gmra.mxu1 %vm222_vm2, %v1843_v24 }
0x1405   :  { %3190 = vmatprep.mubr.msk.bf16.mxu1 %vm3430_vm1, %v3429_v14 }
0x14b8   :  { %v3908_v25 = vpop.f32.mrf.mxu0 }
0x14ba   :  { %v3162_v26 = vpop.f32.mrf.mxu0 }
0x14bc   :  { %v1741_v27 = vpop.f32.mrf.mxu0  ;;  %v3910_v30 = vpop.f32.mrf.mxu1 }
0x14be   :  { %v3163_v33 = vpop.f32.mrf.mxu0  ;;  %v3168_v35 = vpop.f32.mrf.mxu1 }
0x14c0   :  { %v1789_v36 = vpop.f32.mrf.mxu1  ;;  %v1836_v40 = vpop.f32.mrf.mxu0 }
0x14c1   :  { %v1892_v44 = vmul.f32 0.35355338, %v1836_v40 }
0x14c2   :  { %v3169_v45 = vpop.f32.mrf.mxu1  ;;  %v3174_v47 = vpop.f32.mrf.mxu0 }
0x14c3   :  { %v1894_v49 = vadd.f32 %v1892_v44, %v3596_v57 }
0x14c4   :  { %v1839_v50 = vpop.f32.mrf.mxu0  ;;  %v1886_v51 = vpop.f32.mrf.mxu1 }
0x14c5   :  { %v1893_v43 = vmul.f32 0.35355338, %v1886_v51  ;;  %v1896_v46 = vsel %vm222_vm2, %v1894_v49, -inf }
0x14c6   :  { %1897 = vmax.xlane.f32.xlu1 %v1896_v46  ;;  %v3175_v52 = vpop.f32.mrf.mxu0  ;;  %v3180_v53 = vpop.f32.mrf.mxu1 }
0x14c7   :  { %v1895_v54 = vadd.f32 %v1893_v43, %v3599_v63 }
0x14c8   :  { %v1889_v55 = vpop.f32.mrf.mxu1 }
0x14c9   :  { %v1899_v56 = vsel %vm222_vm2, %v1895_v54, -inf }
0x14ca   :  { %1900 = vmax.xlane.f32.xlu0 %v1899_v56  ;;  %v3181_v58 = vpop.f32.mrf.mxu1 }
0x14d7   :  { %1920 = vrot.lane.b32.xlu1 %v3850_v41, %s3436_s24 }
0x14db   :  { %2018 = vrot.lane.b32.xlu1 %v3850_v41, %s3437_s25 }
0x14df   :  { %2068 = vrot.lane.b32.xlu1 %v3854_v48, %s3437_s25 }
0x14e3   :  { %2016 = vrot.lane.b32.xlu1 %v3850_v41, %s3438_s26 }
0x154f   :  { %v1898_v59 = vpop.xlane.xlu1 %1897 }
0x1550   :  { %v1902_v60 = vsub.f32 %v1894_v49, %v1898_v59 }
0x1552   :  { %v1904_v61 = vmul.f32 1.442695, %v1902_v60 }
0x1553   :  { %v1921_v62 = vpop.permute.xlu1 %1920  ;;  %v1901_v0 = vpop.xlane.xlu0 %1900 }
0x1554   :  { %3393 = vpow2.f32 %v1904_v61  ;;  %v1926_v1 = vsel %vm361_vm3, %v1921_v62, 0  ;;  %v1903_v2 = vsub.f32 %v1895_v54, %v1901_v0 }
0x1555   :  { %3183 = vmatpush3.bf16.msra.mxu0 %v1926_v1 }
0x1556   :  { %v1906_v3 = vmul.f32 1.442695, %v1903_v2  ;;  %3194 = vmatprep.subr.bf16.mxu0 %v3429_v14 }
0x1557   :  { %v2019_v7 = vpop.permute.xlu1 %2018 }
0x1558   :  { %3395 = vpow2.f32 %v1906_v3  ;;  %v2024_v11 = vsel %vm222_vm2, %v2019_v7, 0 }
0x155b   :  { %v2069_v13 = vpop.permute.xlu1 %2068 }
0x155c   :  { %v2074_v38 = vsel %vm222_vm2, %v2069_v13, 0 }
0x155f   :  { %v2017_v16 = vpop.permute.xlu1 %2016 }
0x1561   :  { %v3394_v4 = vpop.eup %3393 }
0x1562   :  { %v1908_v42 = vsel %vm222_vm2, %v3394_v4, 0.0 }
0x1563   :  { %1909 = vadd.xlane.f32.xlu0 %v1908_v42 }
0x1565   :  { %v3396_v31 = vpop.eup %3395 }
0x1566   :  { %v1911_v34 = vsel %vm222_vm2, %v3396_v31, 0.0 }
0x1567   :  { %1912 = vadd.xlane.f32.xlu0 %v1911_v34 }
0x157d   :  { %1968 = vrot.lane.b32.xlu0 %v3854_v48, %s3436_s24 }
0x1581   :  { %2066 = vrot.lane.b32.xlu0 %v3854_v48, %s3438_s26  ;;  %s4130_s26 = smov 24  }
0x15ec   :  { %v1910_v37 = vpop.xlane.xlu0 %1909 }
0x15ed   :  { %3397 = vrcp.f32 %v1910_v37 }
0x15f0   :  { %v1913_v32 = vpop.xlane.xlu0 %1912 }
0x15f1   :  { %3399 = vrcp.f32 %v1913_v32 }
0x15f4   :  { %v1969_v39 = vpop.permute.xlu0 %1968 }
0x15f5   :  { %v1974_v5 = vsel %vm361_vm3, %v1969_v39, 0 }
0x15f6   :  { %3189 = vmatpush3.bf16.msra.mxu1 %v1974_v5 }
0x15f7   :  { %3200 = vmatprep.subr.bf16.mxu1 %v3429_v14 }
0x15f8   :  { %v2067_v17 = vpop.permute.xlu0 %2066 }
0x15fa   :  { %v3398_v6 = vpop.eup %3397 }
0x15fb   :  { %v1916_v8 = vmul.f32 %v3398_v6, %v3394_v4 }
0x15fd   :  { %v1918_v9 = vpack.c.bf16 %v1916_v8, %v1916_v8 }
0x15fe   :  { %v3400_v10 = vpop.eup %3399 }
0x15ff   :  { %3185 = vmatmul.mubr.msk.bf16.vlgmr.msra.gmra.mxu0 %vm222_vm2, %v1918_v9  ;;  %v1917_v12 = vmul.f32 %v3400_v10, %v3396_v31 }
0x1600   :  { %3195 = vmatpush3.bf16.xpose.msra.mxu0 %v2024_v11  ;;  %3196 = vmatprep.mubr.msk.bf16.mxu0 %vm3430_vm1, %v3429_v14 }
0x1601   :  { %v1919_v15 = vpack.c.bf16 %v1917_v12, %v1917_v12  ;;  %3206 = vmatprep.subr.bf16.mxu0 %v3429_v14 }
0x1603   :  { %3191 = vmatmul.mubr.msk.bf16.vlgmr.msra.gmra.mxu1 %vm222_vm2, %v1919_v15 }
0x1604   :  { %3201 = vmatpush3.bf16.xpose.msra.mxu1 %v2074_v38  ;;  %3202 = vmatprep.mubr.msk.bf16.mxu1 %vm3430_vm1, %v3429_v14 }
0x1605   :  { %3212 = vmatprep.subr.bf16.mxu1 %v3429_v14 }
0x1607   :  { %3197 = vmatmul.mubr.msk.bf16.vlgmr.msra.gmra.mxu0 %vm222_vm2, %v2017_v16 }
0x1608   :  { %3208 = vmatprep.mubr.msk.bf16.mxu0 %vm3430_vm1, %v3429_v14 }
0x160b   :  { %3203 = vmatmul.mubr.msk.bf16.vlgmr.msra.gmra.mxu1 %vm222_vm2, %v2067_v17 }
0x160c   :  { %3214 = vmatprep.mubr.msk.bf16.mxu1 %vm3430_vm1, %v3429_v14 }
0x16bf   :  { %v3950_v18 = vpop.f32.mrf.mxu0 }
0x16c1   :  { %v3186_v19 = vpop.f32.mrf.mxu0 }
0x16c3   :  { %v1965_v20 = vpop.f32.mrf.mxu0  ;;  %v3952_v21 = vpop.f32.mrf.mxu1 }
0x16c4   :  { %v3302_v22 = vpack.i.bf16 %v3952_v21, %v3950_v18 }
0x16c5   :  { %v3187_v23 = vpop.f32.mrf.mxu0  ;;  %v3192_v24 = vpop.f32.mrf.mxu1 }
0x16c7   :  { %v2013_v26 = vpop.f32.mrf.mxu1  ;;  %v2060_v27 = vpop.f32.mrf.mxu0 }
0x16c8   :  { %v2116_v33 = vmul.f32 0.35355338, %v2060_v27 }
0x16c9   :  { %v3193_v35 = vpop.f32.mrf.mxu1  ;;  %v3198_v36 = vpop.f32.mrf.mxu0 }
0x16ca   :  { %v2118_v40 = vadd.f32 %v2116_v33, %v3596_v57 }
0x16cb   :  { %v2063_v44 = vpop.f32.mrf.mxu0  ;;  %v2110_v45 = vpop.f32.mrf.mxu1 }
0x16cc   :  { %v2117_v47 = vmul.f32 0.35355338, %v2110_v45  ;;  %v2120_v49 = vsel %vm222_vm2, %v2118_v40, -inf }
0x16cd   :  { %2121 = vmax.xlane.f32.xlu1 %v2120_v49  ;;  %v3199_v50 = vpop.f32.mrf.mxu0  ;;  %v3204_v51 = vpop.f32.mrf.mxu1 }
0x16ce   :  { %v2119_v43 = vadd.f32 %v2117_v47, %v3599_v63 }
0x16cf   :  { %v2113_v46 = vpop.f32.mrf.mxu1 }
0x16d0   :  { %v2123_v52 = vsel %vm222_vm2, %v2119_v43, -inf }
0x16d1   :  { %2124 = vmax.xlane.f32.xlu0 %v2123_v52  ;;  %v3205_v53 = vpop.f32.mrf.mxu1 }
0x16de   :  { %2144 = vrot.lane.b32.xlu1 %v3850_v41, %s3439_s27 }
0x16e2   :  { %2242 = vrot.lane.b32.xlu1 %v3850_v41, %s3440_s28 }
0x16e6   :  { %2292 = vrot.lane.b32.xlu1 %v3854_v48, %s3440_s28 }
0x16ea   :  { %2240 = vrot.lane.b32.xlu1 %v3850_v41, %s3441_s29 }
0x1756   :  { %v2122_v54 = vpop.xlane.xlu1 %2121 }
0x1757   :  { %v2126_v55 = vsub.f32 %v2118_v40, %v2122_v54 }
0x1759   :  { %v2128_v56 = vmul.f32 1.442695, %v2126_v55 }
0x175a   :  { %v2145_v58 = vpop.permute.xlu1 %2144  ;;  %v2125_v59 = vpop.xlane.xlu0 %2124 }
0x175b   :  { %3401 = vpow2.f32 %v2128_v56  ;;  %v2150_v60 = vsel %vm361_vm3, %v2145_v58, 0  ;;  %v2127_v61 = vsub.f32 %v2119_v43, %v2125_v59 }
0x175c   :  { %3207 = vmatpush3.bf16.msra.mxu0 %v2150_v60 }
0x175d   :  { %v2130_v62 = vmul.f32 1.442695, %v2127_v61  ;;  %3218 = vmatprep.subr.bf16.mxu0 %v3429_v14 }
0x175e   :  { %v2243_v32 = vpop.permute.xlu1 %2242 }
0x175f   :  { %3403 = vpow2.f32 %v2130_v62  ;;  %v2248_v7 = vsel %vm222_vm2, %v2243_v32, 0 }
0x1762   :  { %v2293_v9 = vpop.permute.xlu1 %2292 }
0x1763   :  { %v2298_v11 = vsel %vm222_vm2, %v2293_v9, 0 }
0x1766   :  { %v2241_v12 = vpop.permute.xlu1 %2240 }
0x1768   :  { %v3402_v0 = vpop.eup %3401 }
0x1769   :  { %v2132_v1 = vsel %vm222_vm2, %v3402_v0, 0.0 }
0x176a   :  { %2133 = vadd.xlane.f32.xlu0 %v2132_v1 }
0x176c   :  { %v3404_v2 = vpop.eup %3403 }
0x176d   :  { %v2135_v3 = vsel %vm222_vm2, %v3404_v2, 0.0 }
0x176e   :  { %2136 = vadd.xlane.f32.xlu0 %v2135_v3 }
0x1784   :  { %2192 = vrot.lane.b32.xlu0 %v3854_v48, %s3439_s27 }
0x1788   :  { %2290 = vrot.lane.b32.xlu0 %v3854_v48, %s3441_s29 }
0x17f3   :  { %v2134_v4 = vpop.xlane.xlu0 %2133 }
0x17f4   :  { %3405 = vrcp.f32 %v2134_v4 }
0x17f7   :  { %v2137_v42 = vpop.xlane.xlu0 %2136 }
0x17f8   :  { %3407 = vrcp.f32 %v2137_v42 }
0x17fb   :  { %v2193_v31 = vpop.permute.xlu0 %2192 }
0x17fc   :  { %v2198_v34 = vsel %vm361_vm3, %v2193_v31, 0  ;;  %v3329_v31 = vld [vmem:[%s4108_s6 + $0x18] sm:$0xff]  }
0x17fd   :  { %3213 = vmatpush3.bf16.msra.mxu1 %v2198_v34  ;;  %v3330_v34 = vld [vmem:[%s4108_s6 + $0x10] sm:$0xff]  }
0x17fe   :  { %3224 = vmatprep.subr.bf16.mxu1 %v3429_v14 }
0x17ff   :  { %v2291_v13 = vpop.permute.xlu0 %2290 }
0x1801   :  { %v3406_v37 = vpop.eup %3405 }
0x1802   :  { %v2140_v39 = vmul.f32 %v3406_v37, %v3402_v0 }
0x1804   :  { %v2142_v5 = vpack.c.bf16 %v2140_v39, %v2140_v39 }
0x1805   :  { %v3408_v6 = vpop.eup %3407 }
0x1806   :  { %3209 = vmatmul.mubr.msk.bf16.vlgmr.msra.gmra.mxu0 %vm222_vm2, %v2142_v5  ;;  %v2141_v8 = vmul.f32 %v3408_v6, %v3404_v2 }
0x1807   :  { %3219 = vmatpush3.bf16.xpose.msra.mxu0 %v2248_v7  ;;  %3220 = vmatprep.mubr.msk.bf16.mxu0 %vm3430_vm1, %v3429_v14 }
0x1808   :  { %v2143_v10 = vpack.c.bf16 %v2141_v8, %v2141_v8  ;;  %3230 = vmatprep.subr.bf16.mxu0 %v3429_v14 }
0x180a   :  { %3215 = vmatmul.mubr.msk.bf16.vlgmr.msra.gmra.mxu1 %vm222_vm2, %v2143_v10 }
0x180b   :  { %3225 = vmatpush3.bf16.xpose.msra.mxu1 %v2298_v11  ;;  %3226 = vmatprep.mubr.msk.bf16.mxu1 %vm3430_vm1, %v3429_v14 }
0x180c   :  { %3236 = vmatprep.subr.bf16.mxu1 %v3429_v14 }
0x180e   :  { %3221 = vmatmul.mubr.msk.bf16.vlgmr.msra.gmra.mxu0 %vm222_vm2, %v2241_v12 }
0x180f   :  { %3232 = vmatprep.mubr.msk.bf16.mxu0 %vm3430_vm1, %v3429_v14 }
0x1812   :  { %3227 = vmatmul.mubr.msk.bf16.vlgmr.msra.gmra.mxu1 %vm222_vm2, %v2291_v13 }
0x1813   :  { %3238 = vmatprep.mubr.msk.bf16.mxu1 %vm3430_vm1, %v3429_v14 }
0x18c6   :  { %v2186_v15 = vpop.f32.mrf.mxu0 }
0x18c8   :  { %v3210_v38 = vpop.f32.mrf.mxu0 }
0x18ca   :  { %v2189_v16 = vpop.f32.mrf.mxu0  ;;  %v2234_v17 = vpop.f32.mrf.mxu1 }
0x18cc   :  { %v3211_v19 = vpop.f32.mrf.mxu0  ;;  %v3216_v20 = vpop.f32.mrf.mxu1 }
0x18ce   :  { %v2237_v23 = vpop.f32.mrf.mxu1  ;;  %v2284_v24 = vpop.f32.mrf.mxu0 }
0x18cf   :  { %v2340_v26 = vmul.f32 0.35355338, %v2284_v24 }
0x18d0   :  { %v3217_v27 = vpop.f32.mrf.mxu1  ;;  %v3222_v33 = vpop.f32.mrf.mxu0 }
0x18d1   :  { %v2342_v35 = vadd.f32 %v2340_v26, %v3596_v57  ;;  %v3307_v57 = vpack.i.bf16 %v2234_v17, %v2186_v15 }
0x18d2   :  { %v2287_v36 = vpop.f32.mrf.mxu0  ;;  %v2334_v40 = vpop.f32.mrf.mxu1 }
0x18d3   :  { %v2341_v44 = vmul.f32 0.35355338, %v2334_v40  ;;  %v2344_v45 = vsel %vm222_vm2, %v2342_v35, -inf }
0x18d4   :  { %2345 = vmax.xlane.f32.xlu1 %v2344_v45  ;;  %v3223_v47 = vpop.f32.mrf.mxu0  ;;  %v3228_v49 = vpop.f32.mrf.mxu1 }
0x18d5   :  { %v2343_v50 = vadd.f32 %v2341_v44, %v3599_v63 }
0x18d6   :  { %v2337_v51 = vpop.f32.mrf.mxu1 }
0x18d7   :  { %v2347_v43 = vsel %vm222_vm2, %v2343_v50, -inf }
0x18d8   :  { %2348 = vmax.xlane.f32.xlu0 %v2347_v43  ;;  %v3229_v46 = vpop.f32.mrf.mxu1 }
0x18e5   :  { %2368 = vrot.lane.b32.xlu1 %v3850_v41, %s4127_s5 }
0x18e9   :  { %3303 = vrot.lane.b32.xlu1 %v3302_v22, %s4128_s3 }
0x18ed   :  { %3308 = vrot.lane.b32.xlu1 %v3307_v57, %s4129_s1 }
0x195d   :  { %v2346_v52 = vpop.xlane.xlu1 %2345 }
0x195e   :  { %v2350_v53 = vsub.f32 %v2342_v35, %v2346_v52 }
0x1960   :  { %v2352_v54 = vmul.f32 1.442695, %v2350_v53 }
0x1961   :  { %v2369_v63 = vpop.permute.xlu1 %2368  ;;  %v2349_v55 = vpop.xlane.xlu0 %2348 }
0x1962   :  { %3409 = vpow2.f32 %v2352_v54  ;;  %v2374_v56 = vsel %vm361_vm3, %v2369_v63, 0  ;;  %v2351_v58 = vsub.f32 %v2343_v50, %v2349_v55 }
0x1963   :  { %3231 = vmatpush3.bf16.msra.mxu0 %v2374_v56 }
0x1964   :  { %v2354_v59 = vmul.f32 1.442695, %v2351_v58  ;;  %3242 = vmatprep.subr.bf16.mxu0 %v3429_v14 }
0x1965   :  { %v3304_v11 = vpop.permute.xlu1 %3303 }
0x1966   :  { %3411 = vpow2.f32 %v2354_v59  ;;  %v3306_v13 = vunpack.i.h.bf16 %v3304_v11  ;;  %v3305_v15 = vunpack.i.l.bf16 %v3304_v11 }
0x1968   :  { %v2489_v19 = vsel %vm222_vm2, %v3910_v30, %v3306_v13  ;;  %v2488_v20 = vsel %vm222_vm2, %v3908_v25, %v3305_v15  ;;  %v2896_v25 = vld [vmem:[%s4109_s7 + $0x1] ss:$0 sm:$0xff] }
0x1969   :  { %v3309_v12 = vpop.permute.xlu1 %3308 }
0x196a   :  { %v3311_v38 = vunpack.i.h.bf16 %v3309_v12  ;;  %v3310_v16 = vunpack.i.l.bf16 %v3309_v12 }
0x196c   :  { %v2491_v26 = vsel %vm1151_vm4, %v2489_v19, %v3311_v38  ;;  %v2490_v27 = vsel %vm1151_vm4, %v2488_v20, %v3310_v16 }
0x196f   :  { %v3410_v41 = vpop.eup %3409 }
0x1970   :  { %v2356_v18 = vsel %vm222_vm2, %v3410_v41, 0.0 }
0x1971   :  { %2357 = vadd.xlane.f32.xlu0 %v2356_v18 }
0x1973   :  { %v3412_v21 = vpop.eup %3411 }
0x1974   :  { %v2359_v22 = vsel %vm222_vm2, %v3412_v21, 0.0 }
0x1975   :  { %2360 = vadd.xlane.f32.xlu0 %v2359_v22 }
0x198b   :  { %2416 = vrot.lane.b32.xlu0 %v3854_v48, %s4127_s5 }
0x19fa   :  { %v2358_v60 = vpop.xlane.xlu0 %2357 }
0x19fb   :  { %3413 = vrcp.f32 %v2358_v60 }
0x19fe   :  { %v2361_v61 = vpop.xlane.xlu0 %2360 }
0x19ff   :  { %3415 = vrcp.f32 %v2361_v61 }
0x1a02   :  { %v2417_v62 = vpop.permute.xlu0 %2416 }
0x1a03   :  { %v2422_v0 = vsel %vm361_vm3, %v2417_v62, 0 }
0x1a04   :  { %3237 = vmatpush3.bf16.msra.mxu1 %v2422_v0 }
0x1a05   :  { %3250 = vmatprep.subr.bf16.mxu1 %v3429_v14 }
0x1a08   :  { %v3414_v1 = vpop.eup %3413 }
0x1a09   :  { %v2364_v2 = vmul.f32 %v3414_v1, %v3410_v41  ;;  %v3332_v41 = vld [vmem:[%s4110_s10 + $0x10] sm:$0xff]  }
0x1a0b   :  { %v2366_v3 = vpack.c.bf16 %v2364_v2, %v2364_v2  ;;  %v2900_v2 = vld [vmem:[%s4111_s8 + $0x1] ss:$0 sm:$0xff] }
0x1a0c   :  { %v3416_v4 = vpop.eup %3415 }
0x1a0d   :  { %3233 = vmatmul.mubr.msk.bf16.vlgmr.msra.gmra.mxu0 %vm222_vm2, %v2366_v3  ;;  %v2365_v42 = vmul.f32 %v3416_v4, %v3412_v21 }
0x1a0e   :  { %3246 = vmatprep.mubr.msk.bf16.mxu0 %vm3430_vm1, %v3429_v14  ;;  %3243 = vmatpush3.bf16.msra.mxu0 %v3329_v31 }
0x1a0f   :  { %v2367_v48 = vpack.c.bf16 %v2365_v42, %v2365_v42  ;;  %3244 = vmatprep.subr.bf16.mxu0 %v3429_v14 }
0x1a11   :  { %3239 = vmatmul.mubr.msk.bf16.vlgmr.msra.gmra.mxu1 %vm222_vm2, %v2367_v48  ;;  %v2901_v48 = vld [vmem:[%s4112_s9 + $0x1] ss:$0 sm:$0xff] }
0x1a12   :  { %3254 = vmatprep.mubr.msk.bf16.mxu1 %vm3430_vm1, %v3429_v14  ;;  %3245 = vmatpush3.bf16.msra.mxu0 %v3330_v34 }
0x1a13   :  { %3258 = vmatprep.subr.bf16.mxu0 %v3429_v14 }
0x1acd   :  { %v2410_v37 = vpop.f32.mrf.mxu0 }
0x1acf   :  { %v3234_v32 = vpop.f32.mrf.mxu0 }
0x1ad1   :  { %v2413_v39 = vpop.f32.mrf.mxu0  ;;  %v2458_v5 = vpop.f32.mrf.mxu1 }
0x1ad2   :  { %v3312_v6 = vpack.i.bf16 %v2458_v5, %v2410_v37  ;;  %v3333_v39 = vld [vmem:[%s4113_s12 + $0x38] sm:$0xff]   ;;  %v3334_v5 = vld [vmem:[%s4113_s12 + $0x30] sm:$0xff]  }
0x1ad3   :  { %v3235_v7 = vpop.f32.mrf.mxu0  ;;  %v3240_v8 = vpop.f32.mrf.mxu1 }
0x1ad4   :  { %3313 = vrot.lane.b32.xlu1 %v3312_v6, %s4130_s26  ;;  %v3335_v6 = vld [vmem:[%s4113_s12 + $0x28] sm:$0xff]   ;;  %v3336_v7 = vld [vmem:[%s4113_s12 + $0x20] sm:$0xff]  }
0x1ad5   :  { %v2461_v9 = vpop.f32.mrf.mxu1  ;;  %v2902_v8 = vld [vmem:[%s4114_s11 + $0x1] ss:$0 sm:$0xff] }
0x1ad7   :  { %v3241_v10 = vpop.f32.mrf.mxu1 }
0x1b46   :  { %v3314_v17 = vpop.permute.xlu1 %3313 }
0x1b47   :  { %v3316_v23 = vunpack.i.h.bf16 %v3314_v17  ;;  %v3315_v24 = vunpack.i.l.bf16 %v3314_v17 }
0x1b49   :  { %v2493_v33 = vsel %vm1154_vm5, %v2491_v26, %v3316_v23  ;;  %v2492_v35 = vsel %vm1154_vm5, %v2490_v27, %v3315_v24 }
0x1b4a   :  { %v2494_v36 = vpack.c.bf16 %v2493_v33, %v2492_v35 }
0x1b4c   :  { %3247 = vmatmul.mubr.msk.bf16.vlgmr.msra.gmra.mxu0 %vm58_vm0, %v2494_v36 }
0x1b4d   :  { %3266 = vmatprep.mubr.msk.bf16.mxu0 %vm3430_vm1, %v3429_v14  ;;  %3259 = vmatpush3.bf16.msra.mxu0 %v3333_v39 }
0x1b4e   :  { %3260 = vmatprep.subr.bf16.mxu0 %v3429_v14 }
0x1b51   :  { %3261 = vmatpush3.bf16.msra.mxu0 %v3334_v5 }
0x1b52   :  { %3262 = vmatprep.subr.bf16.mxu0 %v3429_v14 }
0x1b55   :  { %3263 = vmatpush3.bf16.msra.mxu0 %v3335_v6 }
0x1b56   :  { %3264 = vmatprep.subr.bf16.mxu0 %v3429_v14 }
0x1b59   :  { %3265 = vmatpush3.bf16.msra.mxu0 %v3336_v7 }
0x1c0c   :  { %v2550_v30 = vpop.f32.mrf.mxu0 }
0x1c0d   :  { %v2551_v40 = vadd.f32 %v2896_v25, %v2550_v30 }
0x1c0e   :  { %v3248_v44 = vpop.f32.mrf.mxu0 }
0x1c0f   :  { %v2557_v45 = vadd.f32 %v2551_v40, %v3838_v28 }
0x1c10   :  { %v2553_v47 = vpop.f32.mrf.mxu0 }
0x1c11   :  { %v2554_v49 = vadd.f32 %v2896_v25, %v2553_v47  ;;  %v2559_v50 = vsel %vm58_vm0, %v2557_v45, 0.0 }
0x1c12   :  { %2560 = vadd.xlane.f32.xlu0 %v2559_v50  ;;  %v3249_v51 = vpop.f32.mrf.mxu0 }
0x1c13   :  { %v2558_v43 = vadd.f32 %v2554_v49, %v3840_v29  ;;  %v3331_v29 = vld [vmem:[%s4110_s10 + $0x18] sm:$0xff]   ;;  %v2906_v49 = vld [vmem:[%s4115_s13 + $0x1] ss:$0 sm:$0xff] }
0x1c14   :  { %3251 = vmatpush3.bf16.msra.mxu1 %v3331_v29 }
0x1c15   :  { %v2562_v46 = vsel %vm58_vm0, %v2558_v43, 0.0  ;;  %3252 = vmatprep.subr.bf16.mxu1 %v3429_v14 }
0x1c16   :  { %2563 = vadd.xlane.f32.xlu1 %v2562_v46 }
0x1c18   :  { %3253 = vmatpush3.bf16.msra.mxu1 %v3332_v41 }
0x1c9b   :  { %v2561_v57 = vpop.xlane.xlu0 %2560 }
0x1c9c   :  { %v2565_v52 = vmul.f32 0.03125, %v2561_v57 }
0x1c9e   :  { %v2567_v53 = vsub.f32 %v2557_v45, %v2565_v52 }
0x1c9f   :  { %v2564_v54 = vpop.xlane.xlu1 %2563 }
0x1ca0   :  { %v2566_v63 = vmul.f32 0.03125, %v2564_v54  ;;  %v2569_v55 = vmul.f32 %v2567_v53, %v2567_v53 }
0x1ca2   :  { %v2568_v56 = vsub.f32 %v2558_v43, %v2566_v63  ;;  %v2571_v28 = vsel %vm58_vm0, %v2569_v55, 0.0 }
0x1ca3   :  { %2572 = vadd.xlane.f32.xlu0 %v2571_v28 }
0x1ca4   :  { %v2570_v58 = vmul.f32 %v2568_v56, %v2568_v56 }
0x1ca6   :  { %v2574_v59 = vsel %vm58_vm0, %v2570_v58, 0.0 }
0x1ca7   :  { %2575 = vadd.xlane.f32.xlu0 %v2574_v59 }
0x1d2c   :  { %v2573_v18 = vpop.xlane.xlu0 %2572 }
0x1d2d   :  { %v2577_v21 = vmul.f32 0.03125, %v2573_v18 }
0x1d2f   :  { %v2579_v22 = vadd.f32 1e-12, %v2577_v21 }
0x1d30   :  { %v2576_v60 = vpop.xlane.xlu0 %2575 }
0x1d31   :  { %3417 = vrsqrt.f32 %v2579_v22  ;;  %v2578_v61 = vmul.f32 0.03125, %v2576_v60 }
0x1d33   :  { %v2580_v62 = vadd.f32 1e-12, %v2578_v61 }
0x1d35   :  { %3419 = vrsqrt.f32 %v2580_v62 }
0x1d3e   :  { %v3418_v0 = vpop.eup %3417 }
0x1d3f   :  { %v2583_v1 = vmul.f32 %v3418_v0, %v2567_v53 }
0x1d41   :  { %v2591_v42 = vmul.f32 %v2900_v2, %v2583_v1 }
0x1d42   :  { %v3420_v3 = vpop.eup %3419 }
0x1d43   :  { %v2584_v4 = vmul.f32 %v3420_v3, %v2568_v56  ;;  %v2599_v34 = vadd.f32 %v2901_v48, %v2591_v42  ;;  %v2912_v42 = vld [vmem:[%s4116_s14 + $0x1] ss:$0 sm:$0xff] }
0x1d45   :  { %v2592_v31 = vmul.f32 %v2900_v2, %v2584_v4 }
0x1d47   :  { %v2600_v37 = vadd.f32 %v2901_v48, %v2592_v31  ;;  %v2913_v31 = vld [vmem:[%s4117_s15 + $0x1] ss:$0 sm:$0xff] }
0x1d49   :  { %v2601_v32 = vpack.c.bf16 %v2600_v37, %v2599_v34 }
0x1d4b   :  { %3255 = vmatmul.mubr.msk.bf16.vlgmr.msra.gmra.mxu1 %vm58_vm0, %v2601_v32 }
0x1e0b   :  { %v2657_v9 = vpop.f32.mrf.mxu1 }
0x1e0c   :  { %v2658_v10 = vadd.f32 %v2902_v8, %v2657_v9 }
0x1e0d   :  { %v3256_v11 = vpop.f32.mrf.mxu1 }
0x1e0e   :  { %v2666_v12 = vmul.f32 0.044715, %v2658_v10  ;;  %v2664_v25 = vmul.f32 0.5, %v2658_v10 }
0x1e0f   :  { %v2660_v13 = vpop.f32.mrf.mxu1 }
0x1e10   :  { %v2668_v15 = vmul.f32 %v2666_v12, %v2658_v10  ;;  %v2661_v38 = vadd.f32 %v2902_v8, %v2660_v13 }
0x1e11   :  { %v3257_v16 = vpop.f32.mrf.mxu1 }
0x1e12   :  { %v2670_v17 = vmul.f32 %v2668_v15, %v2658_v10  ;;  %v2667_v19 = vmul.f32 0.044715, %v2661_v38  ;;  %v2665_v30 = vmul.f32 0.5, %v2661_v38 }
0x1e14   :  { %v2672_v20 = vadd.f32 %v2670_v17, %v2658_v10  ;;  %v2669_v23 = vmul.f32 %v2667_v19, %v2661_v38 }
0x1e16   :  { %v2674_v24 = vmul.f32 0.7978846, %v2672_v20  ;;  %v2671_v26 = vmul.f32 %v2669_v23, %v2661_v38 }
0x1e18   :  { %3421 = vtanh.f32 %v2674_v24  ;;  %v2673_v14 = vadd.f32 %v2671_v26, %v2661_v38 }
0x1e1a   :  { %v2675_v27 = vmul.f32 0.7978846, %v2673_v14 }
0x1e1c   :  { %3423 = vtanh.f32 %v2675_v27 }
0x1e25   :  { %v3422_v33 = vpop.eup %3421 }
0x1e26   :  { %v2678_v35 = vadd.f32 1.0, %v3422_v33 }
0x1e28   :  { %v2680_v44 = vmul.f32 %v2678_v35, %v2664_v25 }
0x1e29   :  { %v3424_v36 = vpop.eup %3423 }
0x1e2a   :  { %v2679_v40 = vadd.f32 1.0, %v3424_v36 }
0x1e2c   :  { %v2681_v45 = vmul.f32 %v2679_v40, %v2665_v30 }
0x1e2e   :  { %v2682_v47 = vpack.c.bf16 %v2681_v45, %v2680_v44 }
0x1e30   :  { %3267 = vmatmul.mubr.msk.bf16.vlgmr.msra.gmra.mxu0 %vm1376_vm6, %v2682_v47 }
0x1ef0   :  { %v2750_v50 = vpop.f32.mrf.mxu0 }
0x1ef1   :  { %v2751_v51 = vadd.f32 %v2906_v49, %v2750_v50 }
0x1ef2   :  { %v3268_v43 = vpop.f32.mrf.mxu0 }
0x1ef3   :  { %v2757_v46 = vadd.f32 %v2751_v51, %v2599_v34 }
0x1ef4   :  { %v2753_v57 = vpop.f32.mrf.mxu0 }
0x1ef5   :  { %v2754_v52 = vadd.f32 %v2906_v49, %v2753_v57  ;;  %v2759_v53 = vsel %vm58_vm0, %v2757_v46, 0.0 }
0x1ef6   :  { %2760 = vadd.xlane.f32.xlu0 %v2759_v53  ;;  %v3269_v54 = vpop.f32.mrf.mxu0 }
0x1ef7   :  { %v2758_v63 = vadd.f32 %v2754_v52, %v2600_v37 }
0x1ef9   :  { %v2762_v55 = vsel %vm58_vm0, %v2758_v63, 0.0 }
0x1efa   :  { %2763 = vadd.xlane.f32.xlu1 %v2762_v55 }
0x1f7f   :  { %v2761_v56 = vpop.xlane.xlu0 %2760 }
0x1f80   :  { %v2765_v28 = vmul.f32 0.03125, %v2761_v56 }
0x1f82   :  { %v2767_v58 = vsub.f32 %v2757_v46, %v2765_v28 }
0x1f83   :  { %v2764_v59 = vpop.xlane.xlu1 %2763 }
0x1f84   :  { %v2766_v29 = vmul.f32 0.03125, %v2764_v59  ;;  %v2769_v41 = vmul.f32 %v2767_v58, %v2767_v58 }
0x1f86   :  { %v2768_v18 = vsub.f32 %v2758_v63, %v2766_v29  ;;  %v2771_v21 = vsel %vm58_vm0, %v2769_v41, 0.0 }
0x1f87   :  { %2772 = vadd.xlane.f32.xlu0 %v2771_v21 }
0x1f88   :  { %v2770_v22 = vmul.f32 %v2768_v18, %v2768_v18 }
0x1f8a   :  { %v2774_v60 = vsel %vm58_vm0, %v2770_v22, 0.0 }
0x1f8b   :  { %2775 = vadd.xlane.f32.xlu1 %v2774_v60 }
0x2010   :  { %v2773_v61 = vpop.xlane.xlu0 %2772 }
0x2011   :  { %v2777_v62 = vmul.f32 0.03125, %v2773_v61 }
0x2013   :  { %v2779_v0 = vadd.f32 1e-12, %v2777_v62 }
0x2014   :  { %v2776_v1 = vpop.xlane.xlu1 %2775 }
0x2015   :  { %3425 = vrsqrt.f32 %v2779_v0  ;;  %v2778_v2 = vmul.f32 0.03125, %v2776_v1 }
0x2017   :  { %v2780_v3 = vadd.f32 1e-12, %v2778_v2 }
0x2019   :  { %3427 = vrsqrt.f32 %v2780_v3 }
0x2022   :  { %v3426_v4 = vpop.eup %3425 }
0x2023   :  { %v2783_v48 = vmul.f32 %v3426_v4, %v2767_v58 }
0x2025   :  { %v2791_v34 = vmul.f32 %v2912_v42, %v2783_v48 }
0x2026   :  { %v3428_v37 = vpop.eup %3427 }
0x2027   :  { %v2799_v32 = vadd.f32 %v2913_v31, %v2791_v34  ;;  %v2784_v39 = vmul.f32 %v3428_v37, %v2768_v18 }
0x2029   :  { %2801 = vst.msk [vmem:[%s4118_s16] sm:$0xff] %vm58_vm0, %v2799_v32  ;;  %v2792_v5 = vmul.f32 %v2912_v42, %v2784_v39 }
0x202b   :  { %v2800_v6 = vadd.f32 %v2913_v31, %v2792_v5 }
0x202d   :  { %2802 = vst.msk [vmem:[%s4118_s16 + $0x8] sm:$0xff] %vm58_vm0, %v2800_v6 }

</bundles_post_ra>
